<compile_context>
chip_gen: v7x
topology: tpu7x:2x2x1
jax: 0.10.0
libtpu: 0.0.40
codegen_flags: <defaults>
</compile_context>

<pallas_src>
import jax
import jax.numpy as jnp
import numpy as np
from jax.experimental import pallas as pl
from jax.experimental.pallas import tpu as pltpu

# ---- model dimensions (small, consistent with the module's __init__) --------
IN_FEATURES = 16        # latent dim of z_h
COND_DIM = 32           # pointcloud-conditioning latent dim
FEAT_RES = 128          # feature_resolution (lane-aligned)
NUM_QUALITIES = 2       # num_output_qualities > 0 -> qualities head enabled
NUM_HEAD_OUT = 6 + 1 + NUM_QUALITIES   # tmrp | class_logits | qualities
TILE_B = 256            # batch tile: multiple of 256 to fill v6e/v7x MXU


def _round_up(x, m):
    return (x + m - 1) // m * m


def _decoder_kernel(zc_ref,
                    w_ic_ref, b_ic_ref,
                    w1a_ref, b1a_ref, w1b_ref, b1b_ref,
                    w2a_ref, b2a_ref, w2b_ref, b2b_ref,
                    w_h_ref, b_h_ref,
                    out_ref):
    f32 = jnp.float32
    bf16 = jnp.bfloat16

    zc = zc_ref[...].astype(bf16)

    # Fused in_layer + conditioning projection: one K=48, N=256 matmul with a
    # block-diagonal weight producing [x0 | c] side by side along the lanes.
    xc = jnp.dot(zc, w_ic_ref[...], preferred_element_type=f32) + b_ic_ref[...]
    x = xc[:, :FEAT_RES]        # in_layer(z_h)
    c = xc[:, FEAT_RES:]        # conditioning projection of cond

    # TODO(synk): Unet1D / ResNet1D internals are not given in the reference
    # file; stand-in `self.net` = 2 conditioned residual MLP blocks that
    # preserve feature_resolution (net.out_features == feature_resolution).
    h = jnp.dot((x + c).astype(bf16), w1a_ref[...],
                preferred_element_type=f32) + b1a_ref[...]
    h = jnp.maximum(h, 0.0)
    h = jnp.dot(h.astype(bf16), w1b_ref[...],
                preferred_element_type=f32) + b1b_ref[...]
    x = x + h

    h = jnp.dot((x + c).astype(bf16), w2a_ref[...],
                preferred_element_type=f32) + b2a_ref[...]
    h = jnp.maximum(h, 0.0)
    h = jnp.dot(h.astype(bf16), w2b_ref[...],
                preferred_element_type=f32) + b2b_ref[...]
    x = x + h

    # Fused output heads: one MXU push + one lane-dense (tile_b, 128) store.
    # Columns 0:6 -> tmrp, 6:7 -> class_logits, 7:9 -> qualities, rest padded.
    out_ref[...] = jnp.dot(x.astype(bf16), w_h_ref[...],
                           preferred_element_type=f32) + b_h_ref[...]


def init_params(key):
    """Deterministic synthetic parameters. Weights stored as (in, out), f32."""
    ks = jax.random.split(key, 12)

    def w(k, shape, scale):
        return (jax.random.normal(k, shape, jnp.float32) * scale).astype(jnp.float32)

    return {
        "w_in": w(ks[0], (IN_FEATURES, FEAT_RES), 0.1),
        "b_in": w(ks[1], (1, FEAT_RES), 0.01),
        "w_c": w(ks[2], (COND_DIM, FEAT_RES), 0.1),
        "b_c": w(ks[3], (1, FEAT_RES), 0.01),
        "w1a": w(ks[4], (FEAT_RES, FEAT_RES), 0.05),
        "b1a": jnp.zeros((1, FEAT_RES), jnp.float32),
        "w1b": w(ks[5], (FEAT_RES, FEAT_RES), 0.05),
        "b1b": jnp.zeros((1, FEAT_RES), jnp.float32),
        "w2a": w(ks[6], (FEAT_RES, FEAT_RES), 0.05),
        "b2a": jnp.zeros((1, FEAT_RES), jnp.float32),
        "w2b": w(ks[7], (FEAT_RES, FEAT_RES), 0.05),
        "b2b": jnp.zeros((1, FEAT_RES), jnp.float32),
        "w_t": w(ks[8], (FEAT_RES, 6), 0.1),
        "b_t": jnp.zeros((1, 6), jnp.float32),
        "w_cl": w(ks[9], (FEAT_RES, 1), 0.1),
        "b_cl": jnp.zeros((1, 1), jnp.float32),
        "w_q": w(ks[10], (FEAT_RES, NUM_QUALITIES), 0.1),
        "b_q": jnp.zeros((1, NUM_QUALITIES), jnp.float32),
    }


def pack_params(p):
    """Fuse/pad weights for the kernel; matmul operands cast to bf16."""
    f32, bf16 = jnp.float32, jnp.bfloat16
    K = IN_FEATURES + COND_DIM

    # Block-diagonal [w_in | w_c] -> (48, 256); bias [b_in | b_c] -> (1, 256).
    w_ic = jnp.zeros((K, 2 * FEAT_RES), f32)
    w_ic = w_ic.at[:IN_FEATURES, :FEAT_RES].set(p["w_in"])
    w_ic = w_ic.at[IN_FEATURES:, FEAT_RES:].set(p["w_c"])
    b_ic = jnp.concatenate([p["b_in"], p["b_c"]], axis=-1)

    # Heads concatenated and zero-padded to a lane-dense 128-wide output.
    w_h = jnp.zeros((FEAT_RES, FEAT_RES), f32)
    w_h = w_h.at[:, 0:6].set(p["w_t"])
    w_h = w_h.at[:, 6:7].set(p["w_cl"])
    w_h = w_h.at[:, 7:7 + NUM_QUALITIES].set(p["w_q"])
    b_h = jnp.zeros((1, FEAT_RES), f32)
    b_h = b_h.at[:, 0:6].set(p["b_t"])
    b_h = b_h.at[:, 6:7].set(p["b_cl"])
    b_h = b_h.at[:, 7:7 + NUM_QUALITIES].set(p["b_q"])

    return {
        "w_ic": w_ic.astype(bf16), "b_ic": b_ic,
        "w1a": p["w1a"].astype(bf16), "b1a": p["b1a"],
        "w1b": p["w1b"].astype(bf16), "b1b": p["b1b"],
        "w2a": p["w2a"].astype(bf16), "b2a": p["b2a"],
        "w2b": p["w2b"].astype(bf16), "b2b": p["b2b"],
        "w_h": w_h.astype(bf16), "b_h": b_h,
    }


_PACKED_ORDER = ("w_ic", "b_ic",
                 "w1a", "b1a", "w1b", "b1b",
                 "w2a", "b2a", "w2b", "b2b",
                 "w_h", "b_h")


def conditional_grasp_pose_decoder(z_h, cond, packed, tile_b=TILE_B):
    B = z_h.shape[0]
    tile_b = min(tile_b, _round_up(B, 8))       # keep sublane multiple of 8
    B_pad = _round_up(B, tile_b)                # remainder handling via padding
    if B_pad != B:
        pad = B_pad - B
        z_h = jnp.pad(z_h, ((0, pad), (0, 0)))
        cond = jnp.pad(cond, ((0, pad), (0, 0)))
    zc = jnp.concatenate([z_h, cond], axis=-1).astype(jnp.float32)

    grid = (B_pad // tile_b,)

    in_specs = [pl.BlockSpec((tile_b, IN_FEATURES + COND_DIM), lambda i: (i, 0))]
    in_specs += [pl.BlockSpec(packed[name].shape, lambda i: (0, 0))
                 for name in _PACKED_ORDER]
    out_specs = pl.BlockSpec((tile_b, FEAT_RES), lambda i: (i, 0))
    out_shape = jax.ShapeDtypeStruct((B_pad, FEAT_RES), jnp.float32)

    fn = pl.pallas_call(
        _decoder_kernel,
        grid=grid,
        in_specs=in_specs,
        out_specs=out_specs,
        out_shape=out_shape,
        compiler_params=pltpu.CompilerParams(
            dimension_semantics=("parallel",)),
    )
    out = fn(zc, *[packed[name] for name in _PACKED_ORDER])[:B]

    tmrp = out[:, 0:6]
    cls_logits = out[:, 6:7]
    quals = out[:, 7:7 + NUM_QUALITIES]
    return tmrp, cls_logits, quals


def reference_forward(z_h, cond, p):
    """Pure-JAX reference with the same bf16-operand / f32-accumulate math."""
    bf16, f32 = jnp.bfloat16, jnp.float32

    def mm(a, w):
        return jnp.dot(a.astype(bf16), w.astype(bf16), preferred_element_type=f32)

    x = mm(z_h, p["w_in"]) + p["b_in"]
    c = mm(cond, p["w_c"]) + p["b_c"]
    h = mm(jnp.maximum(mm(x + c, p["w1a"]) + p["b1a"], 0.0), p["w1b"]) + p["b1b"]
    x = x + h
    h = mm(jnp.maximum(mm(x + c, p["w2a"]) + p["b2a"], 0.0), p["w2b"]) + p["b2b"]
    x = x + h
    return (mm(x, p["w_t"]) + p["b_t"],
            mm(x, p["w_cl"]) + p["b_cl"],
            mm(x, p["w_q"]) + p["b_q"])


if __name__ == "__main__":
    key = jax.random.PRNGKey(0)
    k_z, k_c, k_p = jax.random.split(key, 3)

    B = 500  # non-multiple of the tile: exercises the padding / remainder path
    z_h = jax.random.normal(k_z, (B, IN_FEATURES), jnp.float32)
    cond = jax.random.normal(k_c, (B, COND_DIM), jnp.float32)
    params = init_params(k_p)
    packed = pack_params(params)

    tmrp, cls_logits, quals = conditional_grasp_pose_decoder(z_h, cond, packed)
    jax.block_until_ready((tmrp, cls_logits, quals))

    r_tmrp, r_cls, r_quals = reference_forward(z_h, cond, params)
    np.testing.assert_allclose(np.asarray(tmrp), np.asarray(r_tmrp), rtol=1e-2, atol=1e-2)
    np.testing.assert_allclose(np.asarray(cls_logits), np.asarray(r_cls), rtol=1e-2, atol=1e-2)
    np.testing.assert_allclose(np.asarray(quals), np.asarray(r_quals), rtol=1e-2, atol=1e-2)

    assert tmrp.shape == (B, 6)
    assert cls_logits.shape == (B, 1)
    assert quals.shape == (B, NUM_QUALITIES)
    print("KERNEL_OK")
</pallas_src>

<mosaic_0001>
module attributes {stable_mosaic.version = 11 : i64} {
  func.func @_decoder_kernel(%arg0: i32, %arg1: memref<256x48xf32, #tpu.memory_space<vmem>>, %arg2: memref<48x256xbf16, #tpu.memory_space<vmem>>, %arg3: memref<1x256xf32, #tpu.memory_space<vmem>>, %arg4: memref<128x128xbf16, #tpu.memory_space<vmem>>, %arg5: memref<1x128xf32, #tpu.memory_space<vmem>>, %arg6: memref<128x128xbf16, #tpu.memory_space<vmem>>, %arg7: memref<1x128xf32, #tpu.memory_space<vmem>>, %arg8: memref<128x128xbf16, #tpu.memory_space<vmem>>, %arg9: memref<1x128xf32, #tpu.memory_space<vmem>>, %arg10: memref<128x128xbf16, #tpu.memory_space<vmem>>, %arg11: memref<1x128xf32, #tpu.memory_space<vmem>>, %arg12: memref<128x128xbf16, #tpu.memory_space<vmem>>, %arg13: memref<1x128xf32, #tpu.memory_space<vmem>>, %arg14: memref<256x128xf32, #tpu.memory_space<vmem>>) attributes {dimension_semantics = [#tpu.dimension_semantics<parallel>], iteration_bounds = array<i64: 2>, scalar_prefetch = 0 : i64, scratch_operands = 0 : i64, tpu.core_type = #tpu.core_type<tc>, window_params = [{transform_indices = @transform_0, window_bounds = array<i64: 256, 48>}, {pipeline_mode = #tpu.pipeline_mode<synchronous>, transform_indices = @transform_1, window_bounds = array<i64: 48, 256>}, {pipeline_mode = #tpu.pipeline_mode<synchronous>, transform_indices = @transform_2, window_bounds = array<i64: 1, 256>}, {pipeline_mode = #tpu.pipeline_mode<synchronous>, transform_indices = @transform_3, window_bounds = array<i64: 128, 128>}, {pipeline_mode = #tpu.pipeline_mode<synchronous>, transform_indices = @transform_4, window_bounds = array<i64: 1, 128>}, {pipeline_mode = #tpu.pipeline_mode<synchronous>, transform_indices = @transform_5, window_bounds = array<i64: 128, 128>}, {pipeline_mode = #tpu.pipeline_mode<synchronous>, transform_indices = @transform_6, window_bounds = array<i64: 1, 128>}, {pipeline_mode = #tpu.pipeline_mode<synchronous>, transform_indices = @transform_7, window_bounds = array<i64: 128, 128>}, {pipeline_mode = #tpu.pipeline_mode<synchronous>, transform_indices = @transform_8, window_bounds = array<i64: 1, 128>}, {pipeline_mode = #tpu.pipeline_mode<synchronous>, transform_indices = @transform_9, window_bounds = array<i64: 128, 128>}, {pipeline_mode = #tpu.pipeline_mode<synchronous>, transform_indices = @transform_10, window_bounds = array<i64: 1, 128>}, {pipeline_mode = #tpu.pipeline_mode<synchronous>, transform_indices = @transform_11, window_bounds = array<i64: 128, 128>}, {pipeline_mode = #tpu.pipeline_mode<synchronous>, transform_indices = @transform_12, window_bounds = array<i64: 1, 128>}, {transform_indices = @transform_13, window_bounds = array<i64: 256, 128>}]} {
    %c0 = arith.constant 0 : index
    %c0_0 = arith.constant 0 : index
    %0 = vector.load %arg1[%c0, %c0_0] : memref<256x48xf32, #tpu.memory_space<vmem>>, vector<256x48xf32>
    %1 = arith.truncf %0 : vector<256x48xf32> to vector<256x48xbf16>
    %c0_1 = arith.constant 0 : index
    %c0_2 = arith.constant 0 : index
    %2 = vector.load %arg2[%c0_1, %c0_2] : memref<48x256xbf16, #tpu.memory_space<vmem>>, vector<48x256xbf16>
    %cst = arith.constant dense<0.000000e+00> : vector<256x256xf32>
    %3 = tpu.matmul %1, %2, %cst {dimension_numbers = #tpu.dot_dimension_numbers<[1], [0], [0], [1], [0, 0, 1, 1], [], []>} : vector<256x48xbf16>, vector<48x256xbf16>, vector<256x256xf32> -> vector<256x256xf32>
    %c0_3 = arith.constant 0 : index
    %c0_4 = arith.constant 0 : index
    %4 = vector.load %arg3[%c0_3, %c0_4] : memref<1x256xf32, #tpu.memory_space<vmem>>, vector<1x256xf32>
    %5 = vector.broadcast %4 : vector<1x256xf32> to vector<256x256xf32>
    %6 = arith.addf %3, %5 : vector<256x256xf32>
    %7 = vector.extract_strided_slice %6 {offsets = [0, 0], sizes = [256, 128], strides = [1, 1]} : vector<256x256xf32> to vector<256x128xf32>
    %8 = vector.extract_strided_slice %6 {offsets = [0, 128], sizes = [256, 128], strides = [1, 1]} : vector<256x256xf32> to vector<256x128xf32>
    %9 = arith.addf %7, %8 : vector<256x128xf32>
    %10 = arith.truncf %9 : vector<256x128xf32> to vector<256x128xbf16>
    %c0_5 = arith.constant 0 : index
    %c0_6 = arith.constant 0 : index
    %11 = vector.load %arg4[%c0_5, %c0_6] : memref<128x128xbf16, #tpu.memory_space<vmem>>, vector<128x128xbf16>
    %cst_7 = arith.constant dense<0.000000e+00> : vector<256x128xf32>
    %12 = tpu.matmul %10, %11, %cst_7 {dimension_numbers = #tpu.dot_dimension_numbers<[1], [0], [0], [1], [0, 0, 1, 1], [], []>} : vector<256x128xbf16>, vector<128x128xbf16>, vector<256x128xf32> -> vector<256x128xf32>
    %c0_8 = arith.constant 0 : index
    %c0_9 = arith.constant 0 : index
    %13 = vector.load %arg5[%c0_8, %c0_9] : memref<1x128xf32, #tpu.memory_space<vmem>>, vector<1x128xf32>
    %14 = vector.broadcast %13 : vector<1x128xf32> to vector<256x128xf32>
    %15 = arith.addf %12, %14 : vector<256x128xf32>
    %cst_10 = arith.constant 0.000000e+00 : f32
    %16 = vector.broadcast %cst_10 : f32 to vector<256x128xf32>
    %17 = arith.maximumf %15, %16 : vector<256x128xf32>
    %18 = arith.truncf %17 : vector<256x128xf32> to vector<256x128xbf16>
    %c0_11 = arith.constant 0 : index
    %c0_12 = arith.constant 0 : index
    %19 = vector.load %arg6[%c0_11, %c0_12] : memref<128x128xbf16, #tpu.memory_space<vmem>>, vector<128x128xbf16>
    %cst_13 = arith.constant dense<0.000000e+00> : vector<256x128xf32>
    %20 = tpu.matmul %18, %19, %cst_13 {dimension_numbers = #tpu.dot_dimension_numbers<[1], [0], [0], [1], [0, 0, 1, 1], [], []>} : vector<256x128xbf16>, vector<128x128xbf16>, vector<256x128xf32> -> vector<256x128xf32>
    %c0_14 = arith.constant 0 : index
    %c0_15 = arith.constant 0 : index
    %21 = vector.load %arg7[%c0_14, %c0_15] : memref<1x128xf32, #tpu.memory_space<vmem>>, vector<1x128xf32>
    %22 = vector.broadcast %21 : vector<1x128xf32> to vector<256x128xf32>
    %23 = arith.addf %20, %22 : vector<256x128xf32>
    %24 = arith.addf %7, %23 : vector<256x128xf32>
    %25 = arith.addf %24, %8 : vector<256x128xf32>
    %26 = arith.truncf %25 : vector<256x128xf32> to vector<256x128xbf16>
    %c0_16 = arith.constant 0 : index
    %c0_17 = arith.constant 0 : index
    %27 = vector.load %arg8[%c0_16, %c0_17] : memref<128x128xbf16, #tpu.memory_space<vmem>>, vector<128x128xbf16>
    %cst_18 = arith.constant dense<0.000000e+00> : vector<256x128xf32>
    %28 = tpu.matmul %26, %27, %cst_18 {dimension_numbers = #tpu.dot_dimension_numbers<[1], [0], [0], [1], [0, 0, 1, 1], [], []>} : vector<256x128xbf16>, vector<128x128xbf16>, vector<256x128xf32> -> vector<256x128xf32>
    %c0_19 = arith.constant 0 : index
    %c0_20 = arith.constant 0 : index
    %29 = vector.load %arg9[%c0_19, %c0_20] : memref<1x128xf32, #tpu.memory_space<vmem>>, vector<1x128xf32>
    %30 = vector.broadcast %29 : vector<1x128xf32> to vector<256x128xf32>
    %31 = arith.addf %28, %30 : vector<256x128xf32>
    %cst_21 = arith.constant 0.000000e+00 : f32
    %32 = vector.broadcast %cst_21 : f32 to vector<256x128xf32>
    %33 = arith.maximumf %31, %32 : vector<256x128xf32>
    %34 = arith.truncf %33 : vector<256x128xf32> to vector<256x128xbf16>
    %c0_22 = arith.constant 0 : index
    %c0_23 = arith.constant 0 : index
    %35 = vector.load %arg10[%c0_22, %c0_23] : memref<128x128xbf16, #tpu.memory_space<vmem>>, vector<128x128xbf16>
    %cst_24 = arith.constant dense<0.000000e+00> : vector<256x128xf32>
    %36 = tpu.matmul %34, %35, %cst_24 {dimension_numbers = #tpu.dot_dimension_numbers<[1], [0], [0], [1], [0, 0, 1, 1], [], []>} : vector<256x128xbf16>, vector<128x128xbf16>, vector<256x128xf32> -> vector<256x128xf32>
    %c0_25 = arith.constant 0 : index
    %c0_26 = arith.constant 0 : index
    %37 = vector.load %arg11[%c0_25, %c0_26] : memref<1x128xf32, #tpu.memory_space<vmem>>, vector<1x128xf32>
    %38 = vector.broadcast %37 : vector<1x128xf32> to vector<256x128xf32>
    %39 = arith.addf %36, %38 : vector<256x128xf32>
    %40 = arith.addf %24, %39 : vector<256x128xf32>
    %41 = arith.truncf %40 : vector<256x128xf32> to vector<256x128xbf16>
    %c0_27 = arith.constant 0 : index
    %c0_28 = arith.constant 0 : index
    %42 = vector.load %arg12[%c0_27, %c0_28] : memref<128x128xbf16, #tpu.memory_space<vmem>>, vector<128x128xbf16>
    %cst_29 = arith.constant dense<0.000000e+00> : vector<256x128xf32>
    %43 = tpu.matmul %41, %42, %cst_29 {dimension_numbers = #tpu.dot_dimension_numbers<[1], [0], [0], [1], [0, 0, 1, 1], [], []>} : vector<256x128xbf16>, vector<128x128xbf16>, vector<256x128xf32> -> vector<256x128xf32>
    %c0_30 = arith.constant 0 : index
    %c0_31 = arith.constant 0 : index
    %44 = vector.load %arg13[%c0_30, %c0_31] : memref<1x128xf32, #tpu.memory_space<vmem>>, vector<1x128xf32>
    %45 = vector.broadcast %44 : vector<1x128xf32> to vector<256x128xf32>
    %46 = arith.addf %43, %45 : vector<256x128xf32>
    %c0_32 = arith.constant 0 : index
    %c0_33 = arith.constant 0 : index
    %47 = vector.load %arg14[%c0_32, %c0_33] : memref<256x128xf32, #tpu.memory_space<vmem>>, vector<256x128xf32>
    tpu.vector_store %arg14[%c0_32, %c0_33], %46 {strides = array<i32>} : memref<256x128xf32, #tpu.memory_space<vmem>>, vector<256x128xf32>,
    return
  }
  func.func @transform_0(%arg0: i32) -> (i32, i32) {
    %c0_i32 = arith.constant 0 : i32
    %c0_i32_0 = arith.constant 0 : i32
    return %arg0, %c0_i32 : i32, i32
  }
  func.func @transform_1(%arg0: i32) -> (i32, i32) {
    %c0_i32 = arith.constant 0 : i32
    %c0_i32_0 = arith.constant 0 : i32
    %c0_i32_1 = arith.constant 0 : i32
    return %c0_i32, %c0_i32_0 : i32, i32
  }
  func.func @transform_2(%arg0: i32) -> (i32, i32) {
    %c0_i32 = arith.constant 0 : i32
    %c0_i32_0 = arith.constant 0 : i32
    %c0_i32_1 = arith.constant 0 : i32
    return %c0_i32, %c0_i32_0 : i32, i32
  }
  func.func @transform_3(%arg0: i32) -> (i32, i32) {
    %c0_i32 = arith.constant 0 : i32
    %c0_i32_0 = arith.constant 0 : i32
    %c0_i32_1 = arith.constant 0 : i32
    return %c0_i32, %c0_i32_0 : i32, i32
  }
  func.func @transform_4(%arg0: i32) -> (i32, i32) {
    %c0_i32 = arith.constant 0 : i32
    %c0_i32_0 = arith.constant 0 : i32
    %c0_i32_1 = arith.constant 0 : i32
    return %c0_i32, %c0_i32_0 : i32, i32
  }
  func.func @transform_5(%arg0: i32) -> (i32, i32) {
    %c0_i32 = arith.constant 0 : i32
    %c0_i32_0 = arith.constant 0 : i32
    %c0_i32_1 = arith.constant 0 : i32
    return %c0_i32, %c0_i32_0 : i32, i32
  }
  func.func @transform_6(%arg0: i32) -> (i32, i32) {
    %c0_i32 = arith.constant 0 : i32
    %c0_i32_0 = arith.constant 0 : i32
    %c0_i32_1 = arith.constant 0 : i32
    return %c0_i32, %c0_i32_0 : i32, i32
  }
  func.func @transform_7(%arg0: i32) -> (i32, i32) {
    %c0_i32 = arith.constant 0 : i32
    %c0_i32_0 = arith.constant 0 : i32
    %c0_i32_1 = arith.constant 0 : i32
    return %c0_i32, %c0_i32_0 : i32, i32
  }
  func.func @transform_8(%arg0: i32) -> (i32, i32) {
    %c0_i32 = arith.constant 0 : i32
    %c0_i32_0 = arith.constant 0 : i32
    %c0_i32_1 = arith.constant 0 : i32
    return %c0_i32, %c0_i32_0 : i32, i32
  }
  func.func @transform_9(%arg0: i32) -> (i32, i32) {
    %c0_i32 = arith.constant 0 : i32
    %c0_i32_0 = arith.constant 0 : i32
    %c0_i32_1 = arith.constant 0 : i32
    return %c0_i32, %c0_i32_0 : i32, i32
  }
  func.func @transform_10(%arg0: i32) -> (i32, i32) {
    %c0_i32 = arith.constant 0 : i32
    %c0_i32_0 = arith.constant 0 : i32
    %c0_i32_1 = arith.constant 0 : i32
    return %c0_i32, %c0_i32_0 : i32, i32
  }
  func.func @transform_11(%arg0: i32) -> (i32, i32) {
    %c0_i32 = arith.constant 0 : i32
    %c0_i32_0 = arith.constant 0 : i32
    %c0_i32_1 = arith.constant 0 : i32
    return %c0_i32, %c0_i32_0 : i32, i32
  }
  func.func @transform_12(%arg0: i32) -> (i32, i32) {
    %c0_i32 = arith.constant 0 : i32
    %c0_i32_0 = arith.constant 0 : i32
    %c0_i32_1 = arith.constant 0 : i32
    return %c0_i32, %c0_i32_0 : i32, i32
  }
  func.func @transform_13(%arg0: i32) -> (i32, i32) {
    %c0_i32 = arith.constant 0 : i32
    %c0_i32_0 = arith.constant 0 : i32
    return %arg0, %c0_i32 : i32, i32
  }
}

</mosaic_0001>

<bundles_post_ra>
// kernel: tpu_custom_call.1
= control target key start
LH: loop header
LB: loop body
LE: loop exit
PB: predicated region body
PF: predicated region fallthrough
CT: control target
= control target key end

     0   :  { %18 = vsyncpa [#allocation3], 0  ;;  %s4029_s0 = inlined_call_operand.vmem [shape: f32[512,48], index: 0, kind: input, shape index: {}]   ;;  %s4030_s1 = inlined_call_operand.vmem [shape: bf16[48,256], index: 1, kind: input, shape index: {}]   ;;  %s4031_s2 = inlined_call_operand.vmem [shape: f32[1,256], index: 2, kind: input, shape index: {}]   ;;  %s4032_s3 = inlined_call_operand.vmem [shape: bf16[128,128], index: 3, kind: input, shape index: {}]   ;;  %s4033_s4 = inlined_call_operand.vmem [shape: f32[1,128], index: 4, kind: input, shape index: {}]   ;;  %s4034_s5 = inlined_call_operand.vmem [shape: bf16[128,128], index: 5, kind: input, shape index: {}]   ;;  %s4035_s6 = inlined_call_operand.vmem [shape: f32[1,128], index: 6, kind: input, shape index: {}]   ;;  %s4036_s7 = inlined_call_operand.vmem [shape: bf16[128,128], index: 7, kind: input, shape index: {}]   ;;  %s4037_s8 = inlined_call_operand.vmem [shape: f32[1,128], index: 8, kind: input, shape index: {}]   ;;  %s4038_s9 = inlined_call_operand.vmem [shape: bf16[128,128], index: 9, kind: input, shape index: {}]   ;;  %s4039_s10 = inlined_call_operand.vmem [shape: f32[1,128], index: 10, kind: input, shape index: {}]   ;;  %s4040_s11 = inlined_call_operand.vmem [shape: bf16[128,128], index: 11, kind: input, shape index: {}]   ;;  %s4041_s12 = inlined_call_operand.vmem [shape: f32[1,128], index: 12, kind: input, shape index: {}]   ;;  %s4042_s13 = inlined_call_operand.hbm [shape: f32[512,128], index: 13, kind: output, shape index: {}]  }
   0x1   :  { %20 = vsyncpa [#allocation3 + $0x1], 0  ;;  %s2996_s25 = smov 0   ;;  %s2998_s26 = smov 0  }
   0x2   :  { %s3000_s27 = smov 0   ;;  %s3002_s28 = smov 0  }
   0x3 LB: > { %4063 = sst [smem:[#allocation5_spill]] %s2916_s27  ;;  %s3017_s29 = sadd.s32 4294967295, %s2920_s28   ;;  %s2920_s28 = sphi %s3002_s28, %s4109_s28   ;;  %s2916_s27 = sphi %s3000_s27, %s4106_s27   ;;  %s2912_s26 = sphi %s2998_s26, %s4108_s26   ;;  %s2908_s25 = sphi %s2996_s25, %s4107_s25  }
   0x4   : > { %s2321_s30 = sadd.s32 4294967294, %s2920_s28   ;;  %s3021_s14 = sadd.s32 1, %s2920_s28  }
   0x5   : > { %s311_s15 = sadd.s32 1, %s2916_s27  ;;  %s308_s16 = ssub.s32 %s2920_s28, %s3021_s14 }
   0x6   : > { %p321_p0 = scmp.ne.s32.totalorder %s2916_s27, %s2912_s26  ;;  %p309_p1 = scmp.eq.s32.totalorder %s308_s16, 0 }
   0x7   : > { %p322_p2 = scmp.eq.s32.totalorder %s3017_s29, 1  ;;  %p327_p3 = scmp.ne.s32.totalorder %s2912_s26, %s2908_s25 }
   0x8   : > { %p328_p4 = scmp.eq.s32.totalorder %s2321_s30, 1  ;;  %p2324_p7 = scmp.ge.s32.totalorder %s2920_s28, 1 }
   0x9   : > { %s3032_s17 = scalar_select %p309_p1, %s2916_s27, %s311_s15  }
   0xa   : > { %p3034_p5 = por %p322_p2, %p321_p0  ;;  %p3038_p6 = por %p328_p4, %p327_p3 }
   0xb   : > { %4064 = sst [smem:[#allocation6_spill]] %s3032_s17  ;;  %p391_p8 = scmp.lt.s32.totalorder %s2920_s28, 3 }
   0xd   : > { %p392_p9 = pnand %p2324_p7, %p391_p8 }
   0xf   : > { %395 = sbr.rel (%p392_p9) target bundleno = 1483 (0x5cb), region = 72 }
  0x16   : > { %v2809_v0 = vld [vmem:[%s4030_s1 + $0x4] ss:$8 sps:$4 sm:$0xff]   ;;  %s2326_s22 = sshll.u32 %s3017_s29, 5  ;;  %v2811_v1 = vld [vmem:[%s4030_s1] ss:$8 sps:$4 sm:$0xff]   ;;  %v2922_v2 = vmov 0   ;;  %v499_v63 = vlaneseq }
  0x17   : > { %620 = vmatprep.mubr.bf16.mxu0 %v2922_v2  ;;  %p436_p10 = scmp.lt.s32.totalorder %s2326_s22, 63  ;;  %740 = vmatprep.mubr.bf16.mxu1 %v2922_v2  ;;  %v2812_v3 = vld [vmem:[%s4030_s1 + $0x14] ss:$8 sps:$4 sm:$0xff]   ;;  %v2814_v4 = vld [vmem:[%s4030_s1 + $0x10] ss:$8 sps:$4 sm:$0xff]   ;;  %v2818_v9 = vld [vmem:[%s4032_s3] sm:$0xff]  }
  0x18   : > { %588 = vmatprep.subr.bf16.mxu0 %v2809_v0  ;;  %2761 = vmatprep.subr.bf16.mxu1 %v2809_v0  ;;  %v2815_v5 = vld [vmem:[%s4030_s1 + $0x24] ss:$8 sps:$4 sm:$0xff]   ;;  %v2817_v6 = vld [vmem:[%s4030_s1 + $0x20] ss:$8 sps:$4 sm:$0xff]   ;;  %vm539_vm0 = vcmask 392192   ;;  %v2820_v17 = vld [vmem:[%s4032_s3 + $0x10] sm:$0xff]  }
  0x19   : > { %589 = vmatpush1.bf16.msra.mxu0 %v2811_v1  ;;  %s4111_s22 = smov (!%p436_p10, %s2326_s22), 63  ;;  %2764 = vmatpush1.bf16.msra.mxu1 %v2811_v1  ;;  %v2819_v16 = vld [vmem:[%s4032_s3 + $0x8] sm:$0xff]   ;;  %v2821_v24 = vld [vmem:[%s4032_s3 + $0x18] sm:$0xff]   ;;  %v2822_v58 = vld [vmem:[%s4032_s3 + $0x20] sm:$0xff]   ;;  %v500_v1 = vshrl.u32 %v499_v63, 7  ;;  %s432_s27 = sand.u32 1, %s2912_s26  }
  0x1a   : > { %590 = vmatprep.subr.bf16.mxu0 %v2812_v3  ;;  %2762 = vmatprep.subr.bf16.mxu1 %v2812_v3  ;;  %s2327_s24 = sshll.u32 %s4111_s22, 3  ;;  %v2823_v60 = vld [vmem:[%s4032_s3 + $0x28] sm:$0xff]   ;;  %v2824_v61 = vld [vmem:[%s4032_s3 + $0x30] sm:$0xff]   ;;  %v2825_v62 = vld [vmem:[%s4032_s3 + $0x38] sm:$0xff]   ;;  %s2325_s17 = sshll.u32 %s432_s27, 8 }
  0x1b   : > { %s3065_s30 = scalar_lea.vmem %s4029_s0, %s2327_s24  ;;  %v2826_v0 = vld [vmem:[%s4034_s5] sm:$0xff]   ;;  %v505_v3 = vsub.s32 1, %v500_v1  ;;  %s2400_s23 = sshll.u32 %s3017_s29, 12 }
  0x1c   : > { %v443_v7 = vld [vmem:[%s3065_s30] sm:$0xff]  ;;  %v444_v8 = vld [vmem:[%s3065_s30 + $0x8] sm:$0xff]  ;;  %v445_v13 = vld [vmem:[%s3065_s30 + $0x10] sm:$0xff]  ;;  %s3978_s22 = scalar_lea.hbm %s4042_s13, %s2400_s23  ;;  %s3988_s29 = scalar_lea.sflag [#allocation3], %s432_s27 }
  0x1d   : > { %591 = vmatpush1.bf16.msra.mxu0 %v2814_v4  ;;  %2765 = vmatpush1.bf16.msra.mxu1 %v2814_v4  ;;  %v475_v10 = vpack.c.bf16 %v444_v8, %v443_v7  ;;  %v467_v11 = vld [vmem:[%s3065_s30 + $0xc0] sm:$0xff]  ;;  %v468_v12 = vld [vmem:[%s3065_s30 + $0xc8] sm:$0xff]  ;;  %v446_v14 = vld [vmem:[%s3065_s30 + $0x18] sm:$0xff]  ;;  %s2923_s20 = smov [#allocation2]  }
  0x1e   : > { %592 = vmatprep.subr.bf16.mxu0 %v2815_v5  ;;  %2763 = vmatprep.subr.bf16.mxu1 %v2815_v5  ;;  %v487_v15 = vpack.c.bf16 %v468_v12, %v467_v11  ;;  %v476_v18 = vpack.c.bf16 %v446_v14, %v445_v13  ;;  %v469_v19 = vld [vmem:[%s3065_s30 + $0xd0] sm:$0xff]  ;;  %v470_v20 = vld [vmem:[%s3065_s30 + $0xd8] sm:$0xff]  ;;  %v447_v21 = vld [vmem:[%s3065_s30 + $0x20] sm:$0xff]  ;;  %s2862_s21 = sshll.u32 %s2923_s20, 4  ;;  %s2863_s21 = int_to_ptr.vmem [resolvable:$false] %s2862_s21 }
  0x1f   : > { %v448_v22 = vld [vmem:[%s3065_s30 + $0x28] sm:$0xff]  ;;  %v488_v23 = vpack.c.bf16 %v470_v20, %v469_v19  ;;  %v471_v25 = vld [vmem:[%s3065_s30 + $0xe0] sm:$0xff]  ;;  %v449_v28 = vld [vmem:[%s3065_s30 + $0x30] sm:$0xff]  ;;  %s2864_s23 = scalar_lea.vmem %s2863_s21, 8192 }
  0x20   : > { %v472_v26 = vld [vmem:[%s3065_s30 + $0xe8] sm:$0xff]  ;;  %v477_v27 = vpack.c.bf16 %v448_v22, %v447_v21  ;;  %v450_v29 = vld [vmem:[%s3065_s30 + $0x38] sm:$0xff]  ;;  %v473_v31 = vld [vmem:[%s3065_s30 + $0xf0] sm:$0xff] }
  0x21   : > { %593 = vmatpush1.bf16.msra.mxu0 %v2817_v6  ;;  %2766 = vmatpush1.bf16.msra.mxu1 %v2817_v6  ;;  %v489_v30 = vpack.c.bf16 %v472_v26, %v471_v25  ;;  %v474_v32 = vld [vmem:[%s3065_s30 + $0xf8] sm:$0xff]  ;;  %v478_v33 = vpack.c.bf16 %v450_v29, %v449_v28  ;;  %v451_v34 = vld [vmem:[%s3065_s30 + $0x40] sm:$0xff]  ;;  %v452_v35 = vld [vmem:[%s3065_s30 + $0x48] sm:$0xff] }
  0x22   : > { %2521 = vmatprep.subr.bf16.mxu1 %v2818_v9  ;;  %v490_v36 = vpack.c.bf16 %v474_v32, %v473_v31  ;;  %v479_v37 = vpack.c.bf16 %v452_v35, %v451_v34  ;;  %v453_v38 = vld [vmem:[%s3065_s30 + $0x50] sm:$0xff]  ;;  %v454_v39 = vld [vmem:[%s3065_s30 + $0x58] sm:$0xff]  ;;  %v455_v41 = vld [vmem:[%s3065_s30 + $0x60] sm:$0xff] }
  0x23   : > { %v480_v40 = vpack.c.bf16 %v454_v39, %v453_v38  ;;  %v456_v42 = vld [vmem:[%s3065_s30 + $0x68] sm:$0xff]  ;;  %v457_v44 = vld [vmem:[%s3065_s30 + $0x70] sm:$0xff]  ;;  %v458_v45 = vld [vmem:[%s3065_s30 + $0x78] sm:$0xff] }
  0x24   : > { %2334 = vmatmul.mubr.msk.bf16.vlgmr.msra.gmra.mrb[0].mxu0 %vm539_vm0, %v475_v10  ;;  %2346 = vmatmul.mubr.msk.bf16.vlgmr.msra.gmra.mrb[0].mxu1 %vm539_vm0, %v487_v15  ;;  %v481_v43 = vpack.c.bf16 %v456_v42, %v455_v41  ;;  %v482_v46 = vpack.c.bf16 %v458_v45, %v457_v44  ;;  %v459_v47 = vld [vmem:[%s3065_s30 + $0x80] sm:$0xff]  ;;  %v460_v48 = vld [vmem:[%s3065_s30 + $0x88] sm:$0xff]  ;;  %v461_v50 = vld [vmem:[%s3065_s30 + $0x90] sm:$0xff] }
  0x25   : > { %630 = vmatprep.mubr.bf16.mxu0 %v2922_v2  ;;  %750 = vmatprep.mubr.bf16.mxu1 %v2922_v2  ;;  %v483_v49 = vpack.c.bf16 %v460_v48, %v459_v47  ;;  %v462_v51 = vld [vmem:[%s3065_s30 + $0x98] sm:$0xff]  ;;  %v463_v53 = vld [vmem:[%s3065_s30 + $0xa0] sm:$0xff]  ;;  %v464_v54 = vld [vmem:[%s3065_s30 + $0xa8] sm:$0xff] }
  0x26   : > { %2522 = vmatpush3.bf16.msra.mxu1 %v2818_v9  ;;  %v484_v52 = vpack.c.bf16 %v462_v51, %v461_v50  ;;  %v485_v55 = vpack.c.bf16 %v464_v54, %v463_v53  ;;  %v465_v56 = vld [vmem:[%s3065_s30 + $0xb0] sm:$0xff]  ;;  %v466_v57 = vld [vmem:[%s3065_s30 + $0xb8] sm:$0xff]  ;;  %v497_v4 = vld [vmem:[%s4031_s2] sm:$0x3]  ;;  %s3913_s30 = scalar_lea.vmem [#allocation2], %s2325_s17 }
  0x27   : > { %2523 = vmatprep.subr.bf16.mxu1 %v2819_v16  ;;  %v486_v59 = vpack.c.bf16 %v466_v57, %v465_v56  ;;  %v3164_v6 = vrot.slane %v497_v4, %v505_v3  ;;  %v2827_v38 = vld [vmem:[%s4034_s5 + $0x8] sm:$0xff]   ;;  %v2828_v48 = vld [vmem:[%s4034_s5 + $0x10] sm:$0xff]   ;;  %s2259_s24 = sshll.u32 %s3913_s30, 4  ;;  %s3980_s24 = int_to_ptr.vmem [resolvable:$true] %s2259_s24 }
  0x28   : > { %s2858_s17 = scalar_lea.vmem %s3980_s24, 4096  ;;  %p2865_p0 = scmp.lt.s32.totalorder %s3980_s24, %s2863_s21 }
  0x29   : > { %p2859_p11 = scmp.ne.s32.totalorder %s3980_s24, %s2858_s17  ;;  %p2866_p1 = scmp.lt.s32.totalorder %s2864_s23, %s2858_s17 }
  0x2a   : > { %2524 = vmatpush3.bf16.msra.mxu1 %v2819_v16 }
  0x2b   : > { %2525 = vmatprep.subr.bf16.mxu1 %v2820_v17  ;;  %p2860_p12 = pnand %p2859_p11, %p3034_p5  ;;  %p2867_p2 = por %p2866_p1, %p2865_p0 }
  0x2c   : > { %2335 = vmatmul.mubr.msk.bf16.gmra.mrb[4].mxu0 %vm539_vm0, %v476_v18  ;;  %2347 = vmatmul.mubr.msk.bf16.gmra.mrb[4].mxu1 %vm539_vm0, %v488_v23 }
  0x2d   : > { %640 = vmatprep.mubr.bf16.mxu0 %v2922_v2  ;;  %760 = vmatprep.mubr.bf16.mxu1 %v2922_v2  ;;  %p2861_p13 = pneg %p2860_p12 }
  0x2e   : > { %2526 = vmatpush3.bf16.msra.mxu1 %v2820_v17 }
  0x2f   : > { %2527 = vmatprep.subr.bf16.mxu1 %v2821_v24  ;;  %p2868_p3 = pnand %p2867_p2, %p2861_p13 }
  0x32   : > { %2528 = vmatpush3.bf16.msra.mxu1 %v2821_v24 }
  0x33   : > { %2529 = vmatprep.subr.bf16.mxu1 %v2822_v58 }
  0x34   : > { %2336 = vmatmul.mubr.msk.bf16.gmra.mrb[8].mxu0 %vm539_vm0, %v477_v27  ;;  %2348 = vmatmul.mubr.msk.bf16.gmra.mrb[8].mxu1 %vm539_vm0, %v489_v30 }
  0x35   : > { %650 = vmatprep.mubr.bf16.mxu0 %v2922_v2  ;;  %770 = vmatprep.mubr.bf16.mxu1 %v2922_v2 }
  0x36   : > { %2530 = vmatpush3.bf16.msra.mxu1 %v2822_v58 }
  0x37   : > { %2531 = vmatprep.subr.bf16.mxu1 %v2823_v60 }
  0x3a   : > { %2532 = vmatpush3.bf16.msra.mxu1 %v2823_v60 }
  0x3b   : > { %2533 = vmatprep.subr.bf16.mxu1 %v2824_v61 }
  0x3c   : > { %2337 = vmatmul.mubr.msk.bf16.gmra.mrb[12].mxu0 %vm539_vm0, %v478_v33  ;;  %2349 = vmatmul.mubr.msk.bf16.gmra.mrb[12].mxu1 %vm539_vm0, %v490_v36 }
  0x3d   : > { %660 = vmatprep.mubr.bf16.mxu0 %v2922_v2 }
  0x3e   : > { %2534 = vmatpush3.bf16.msra.mxu1 %v2824_v61 }
  0x3f   : > { %2535 = vmatprep.subr.bf16.mxu1 %v2825_v62 }
  0x42   : > { %2536 = vmatpush3.bf16.msra.mxu1 %v2825_v62 }
  0x43   : > { %2569 = vmatprep.subr.bf16.mxu1 %v2826_v0 }
  0x44   : > { %2338 = vmatmul.mubr.msk.bf16.gmra.mrb[16].mxu0 %vm539_vm0, %v479_v37 }
  0x45   : > { %670 = vmatprep.mubr.bf16.mxu0 %v2922_v2 }
  0x4c   : > { %2339 = vmatmul.mubr.msk.bf16.gmra.mrb[20].mxu0 %vm539_vm0, %v480_v40 }
  0x4d   : > { %680 = vmatprep.mubr.bf16.mxu0 %v2922_v2 }
  0x54   : > { %2340 = vmatmul.mubr.msk.bf16.gmra.mrb[24].mxu0 %vm539_vm0, %v481_v43 }
  0x55   : > { %690 = vmatprep.mubr.bf16.mxu0 %v2922_v2 }
  0x5c   : > { %2341 = vmatmul.mubr.msk.bf16.gmra.mrb[28].mxu0 %vm539_vm0, %v482_v46 }
  0x5d   : > { %700 = vmatprep.mubr.bf16.mxu0 %v2922_v2 }
  0x64   : > { %2342 = vmatmul.mubr.msk.bf16.gmra.mrb[32].mxu0 %vm539_vm0, %v483_v49 }
  0x65   : > { %710 = vmatprep.mubr.bf16.mxu0 %v2922_v2 }
  0x6c   : > { %2343 = vmatmul.mubr.msk.bf16.gmra.mrb[36].mxu0 %vm539_vm0, %v484_v52 }
  0x6d   : > { %720 = vmatprep.mubr.bf16.mxu0 %v2922_v2 }
  0x74   : > { %2344 = vmatmul.mubr.msk.bf16.gmra.mrb[40].mxu0 %vm539_vm0, %v485_v55  ;;  %v2829_v55 = vld [vmem:[%s4034_s5 + $0x18] sm:$0xff]  }
  0x75   : > { %730 = vmatprep.mubr.bf16.mxu0 %v2922_v2  ;;  %v501_v2 = vsub.s32 0, %v500_v1  ;;  %v2830_v1 = vld [vmem:[%s4034_s5 + $0x20] sm:$0xff]  }
  0x77   : > { %v3162_v5 = vrot.slane %v497_v4, %v501_v2 }
  0x7c   : > { %2345 = vmatmul.mubr.msk.bf16.gmra.mrb[44].mxu0 %vm539_vm0, %v486_v59 }
  0xf7   : > { %v622_v7 = vpop.f32.mrb[0].mxu0  ;;  %v3175_v14 = vpop.f32.mrb[0].mxu1 }
  0xf8   : > { %v624_v8 = vpop.f32.mrb[1].mxu0  ;;  %v3167_v9 = vadd.f32 %v622_v7, %v3162_v5  ;;  %v3180_v16 = vpop.f32.mrb[1].mxu1 }
  0xf9   : > { %v3170_v10 = vadd.f32 %v624_v8, %v3164_v6  ;;  %v626_v11 = vpop.f32.mrb[2].mxu0  ;;  %v3182_v17 = vpop.f32.mrb[2].mxu1 }
  0xfa   : > { %v3173_v12 = vadd.f32 %v626_v11, %v3162_v5  ;;  %v628_v13 = vpop.f32.mrb[3].mxu0  ;;  %v3188_v20 = vpop.f32.mrb[3].mxu1 }
  0xfb   : > { %v3178_v15 = vadd.f32 %v628_v13, %v3164_v6  ;;  %v781_v18 = vadd.f32 %v3170_v10, %v3167_v9  ;;  %v2831_v13 = vld [vmem:[%s4034_s5 + $0x28] sm:$0xff]  }
  0xfd   : > { %v782_v19 = vadd.f32 %v3178_v15, %v3173_v12 }
  0xff   : > { %v632_v21 = vpop.f32.mrb[4].mxu0  ;;  %v813_v22 = vpack.c.bf16 %v782_v19, %v781_v18  ;;  %v3199_v29 = vpop.f32.mrb[4].mxu1 }
 0x100   : > { %v634_v23 = vpop.f32.mrb[5].mxu0  ;;  %v3191_v24 = vadd.f32 %v632_v21, %v3162_v5  ;;  %v3204_v31 = vpop.f32.mrb[5].mxu1 }
 0x101   : > { %v3194_v25 = vadd.f32 %v634_v23, %v3164_v6  ;;  %v636_v26 = vpop.f32.mrb[6].mxu0  ;;  %2537 = vmatprep.mubr.bf16.mxu1 %v813_v22  ;;  %v3206_v32 = vpop.f32.mrb[6].mxu1 }
 0x102   : > { %v3197_v27 = vadd.f32 %v636_v26, %v3162_v5  ;;  %v638_v28 = vpop.f32.mrb[7].mxu0  ;;  %v3212_v35 = vpop.f32.mrb[7].mxu1 }
 0x103   : > { %v3202_v30 = vadd.f32 %v638_v28, %v3164_v6  ;;  %v783_v33 = vadd.f32 %v3194_v25, %v3191_v24 }
 0x105   : > { %v784_v34 = vadd.f32 %v3202_v30, %v3197_v27 }
 0x107   : > { %v814_v36 = vpack.c.bf16 %v784_v34, %v783_v33  ;;  %v642_v37 = vpop.f32.mrb[8].mxu0  ;;  %v3226_v45 = vpop.f32.mrb[8].mxu1 }
 0x108   : > { %v644_v39 = vpop.f32.mrb[9].mxu0  ;;  %v3218_v40 = vadd.f32 %v642_v37, %v3162_v5  ;;  %v3231_v47 = vpop.f32.mrb[9].mxu1 }
 0x109   : > { %v3221_v41 = vadd.f32 %v644_v39, %v3164_v6  ;;  %v646_v42 = vpop.f32.mrb[10].mxu0  ;;  %2538 = vmatmul.mubr.bf16.vlgmr.msra.gmra.mrb[16].mxu1 %v814_v36  ;;  %v3236_v49 = vpop.f32.mrb[10].mxu1 }
 0x10a   : > { %v3224_v43 = vadd.f32 %v646_v42, %v3162_v5  ;;  %v648_v44 = vpop.f32.mrb[11].mxu0  ;;  %2570 = vmatpush3.bf16.msra.mxu1 %v2826_v0  ;;  %v3242_v52 = vpop.f32.mrb[11].mxu1 }
 0x10b   : > { %v3229_v46 = vadd.f32 %v648_v44, %v3164_v6  ;;  %2571 = vmatprep.subr.bf16.mxu1 %v2827_v38  ;;  %v785_v50 = vadd.f32 %v3221_v41, %v3218_v40 }
 0x10d   : > { %v786_v51 = vadd.f32 %v3229_v46, %v3224_v43 }
 0x10e   : > { %2572 = vmatpush3.bf16.msra.mxu1 %v2827_v38 }
 0x10f   : > { %v652_v53 = vpop.f32.mrb[12].mxu0  ;;  %v815_v54 = vpack.c.bf16 %v786_v51, %v785_v50  ;;  %2573 = vmatprep.subr.bf16.mxu1 %v2828_v48  ;;  %v3256_v62 = vpop.f32.mrb[12].mxu1 }
 0x110   : > { %v654_v56 = vpop.f32.mrb[13].mxu0  ;;  %v3248_v57 = vadd.f32 %v652_v53, %v3162_v5  ;;  %v3261_v0 = vpop.f32.mrb[13].mxu1 }
 0x111   : > { %v3251_v58 = vadd.f32 %v654_v56, %v3164_v6  ;;  %v656_v59 = vpop.f32.mrb[14].mxu0  ;;  %2541 = vmatprep.mubr.bf16.mxu1 %v815_v54  ;;  %v3266_v2 = vpop.f32.mrb[14].mxu1 }
 0x112   : > { %v3254_v60 = vadd.f32 %v656_v59, %v3162_v5  ;;  %v658_v61 = vpop.f32.mrb[15].mxu0  ;;  %2574 = vmatpush3.bf16.msra.mxu1 %v2828_v48  ;;  %v3272_v7 = vpop.f32.mrb[15].mxu1 }
 0x113   : > { %v3259_v63 = vadd.f32 %v658_v61, %v3164_v6  ;;  %2575 = vmatprep.subr.bf16.mxu1 %v2829_v55  ;;  %v787_v3 = vadd.f32 %v3251_v58, %v3248_v57 }
 0x115   : > { %v788_v4 = vadd.f32 %v3259_v63, %v3254_v60 }
 0x116   : > { %2576 = vmatpush3.bf16.msra.mxu1 %v2829_v55 }
 0x117   : > { %v662_v8 = vpop.f32.mrb[16].mxu0  ;;  %v816_v11 = vpack.c.bf16 %v788_v4, %v787_v3  ;;  %2577 = vmatprep.subr.bf16.mxu1 %v2830_v1 }
 0x118   : > { %v664_v18 = vpop.f32.mrb[17].mxu0  ;;  %v3278_v19 = vadd.f32 %v662_v8, %v3162_v5 }
 0x119   : > { %v3281_v21 = vadd.f32 %v664_v18, %v3164_v6  ;;  %v666_v22 = vpop.f32.mrb[18].mxu0  ;;  %2542 = vmatmul.mubr.bf16.gmra.mrb[20].mxu1 %v816_v11 }
 0x11a   : > { %v3284_v23 = vadd.f32 %v666_v22, %v3162_v5  ;;  %v668_v26 = vpop.f32.mrb[19].mxu0  ;;  %2578 = vmatpush3.bf16.msra.mxu1 %v2830_v1 }
 0x11b   : > { %v3287_v28 = vadd.f32 %v668_v26, %v3164_v6  ;;  %2579 = vmatprep.subr.bf16.mxu1 %v2831_v13  ;;  %v789_v33 = vadd.f32 %v3281_v21, %v3278_v19 }
 0x11d   : > { %v790_v34 = vadd.f32 %v3287_v28, %v3284_v23 }
 0x11e   : > { %2580 = vmatpush3.bf16.msra.mxu1 %v2831_v13 }
 0x11f   : > { %v672_v36 = vpop.f32.mrb[20].mxu0  ;;  %v817_v37 = vpack.c.bf16 %v790_v34, %v789_v33 }
 0x120   : > { %v674_v38 = vpop.f32.mrb[21].mxu0  ;;  %v3294_v39 = vadd.f32 %v672_v36, %v3162_v5 }
 0x121   : > { %v3297_v42 = vadd.f32 %v674_v38, %v3164_v6  ;;  %v676_v44 = vpop.f32.mrb[22].mxu0  ;;  %2545 = vmatprep.mubr.bf16.mxu1 %v817_v37 }
 0x122   : > { %v3300_v48 = vadd.f32 %v676_v44, %v3162_v5  ;;  %v678_v50 = vpop.f32.mrb[23].mxu0 }
 0x123   : > { %v3303_v51 = vadd.f32 %v678_v50, %v3164_v6  ;;  %v791_v53 = vadd.f32 %v3297_v42, %v3294_v39 }
 0x125   : > { %v792_v54 = vadd.f32 %v3303_v51, %v3300_v48 }
 0x127   : > { %v682_v55 = vpop.f32.mrb[24].mxu0  ;;  %v818_v56 = vpack.c.bf16 %v792_v54, %v791_v53 }
 0x128   : > { %v684_v59 = vpop.f32.mrb[25].mxu0  ;;  %v3310_v61 = vadd.f32 %v682_v55, %v3162_v5 }
 0x129   : > { %v3313_v1 = vadd.f32 %v684_v59, %v3164_v6  ;;  %v686_v3 = vpop.f32.mrb[26].mxu0  ;;  %2546 = vmatmul.mubr.bf16.gmra.mrb[24].mxu1 %v818_v56 }
 0x12a   : > { %v3316_v4 = vadd.f32 %v686_v3, %v3162_v5  ;;  %v688_v8 = vpop.f32.mrb[27].mxu0 }
 0x12b   : > { %v3319_v11 = vadd.f32 %v688_v8, %v3164_v6  ;;  %v793_v13 = vadd.f32 %v3313_v1, %v3310_v61 }
 0x12d   : > { %v794_v18 = vadd.f32 %v3319_v11, %v3316_v4 }
 0x12f   : > { %v692_v22 = vpop.f32.mrb[28].mxu0  ;;  %v819_v26 = vpack.c.bf16 %v794_v18, %v793_v13 }
 0x130   : > { %v694_v33 = vpop.f32.mrb[29].mxu0  ;;  %v3326_v34 = vadd.f32 %v692_v22, %v3162_v5 }
 0x131   : > { %v3329_v36 = vadd.f32 %v694_v33, %v3164_v6  ;;  %v696_v37 = vpop.f32.mrb[30].mxu0  ;;  %2549 = vmatprep.mubr.bf16.mxu1 %v819_v26 }
 0x132   : > { %v3332_v38 = vadd.f32 %v696_v37, %v3162_v5  ;;  %v698_v44 = vpop.f32.mrb[31].mxu0 }
 0x133   : > { %v3335_v50 = vadd.f32 %v698_v44, %v3164_v6  ;;  %v795_v53 = vadd.f32 %v3329_v36, %v3326_v34 }
 0x135   : > { %v796_v54 = vadd.f32 %v3335_v50, %v3332_v38 }
 0x137   : > { %v702_v55 = vpop.f32.mrb[32].mxu0  ;;  %v820_v56 = vpack.c.bf16 %v796_v54, %v795_v53 }
 0x138   : > { %v704_v59 = vpop.f32.mrb[33].mxu0  ;;  %v3342_v3 = vadd.f32 %v702_v55, %v3162_v5 }
 0x139   : > { %v3345_v8 = vadd.f32 %v704_v59, %v3164_v6  ;;  %v706_v13 = vpop.f32.mrb[34].mxu0  ;;  %2550 = vmatmul.mubr.bf16.gmra.mrb[28].mxu1 %v820_v56 }
 0x13a   : > { %4067 = vst [vmem:[#allocation7_spill] sm:$0xff] %v3342_v3  ;;  %v3348_v18 = vadd.f32 %v706_v13, %v3162_v5  ;;  %v708_v22 = vpop.f32.mrb[35].mxu0 }
 0x13b   : > { %4068 = vst [vmem:[#allocation8_spill] sm:$0xff] %v3345_v8  ;;  %v3351_v26 = vadd.f32 %v708_v22, %v3164_v6  ;;  %v797_v33 = vadd.f32 %v3345_v8, %v3342_v3 }
 0x13c   : > { %4069 = vst [vmem:[#allocation9_spill] sm:$0xff] %v3348_v18 }
 0x13d   : > { %4070 = vst [vmem:[#allocation10_spill] sm:$0xff] %v3351_v26  ;;  %v798_v37 = vadd.f32 %v3351_v26, %v3348_v18 }
 0x13f   : > { %v712_v44 = vpop.f32.mrb[36].mxu0  ;;  %v821_v53 = vpack.c.bf16 %v798_v37, %v797_v33 }
 0x140   : > { %v714_v54 = vpop.f32.mrb[37].mxu0  ;;  %v3358_v55 = vadd.f32 %v712_v44, %v3162_v5 }
 0x141   : > { %v3361_v56 = vadd.f32 %v714_v54, %v3164_v6  ;;  %v716_v59 = vpop.f32.mrb[38].mxu0  ;;  %2553 = vmatprep.mubr.bf16.mxu1 %v821_v53 }
 0x142   : > { %v3364_v13 = vadd.f32 %v716_v59, %v3162_v5  ;;  %v718_v22 = vpop.f32.mrb[39].mxu0 }
 0x143   : > { %4071 = vst [vmem:[#allocation11_spill] sm:$0xff] %v3361_v56  ;;  %v3367_v8 = vadd.f32 %v718_v22, %v3164_v6  ;;  %v799_v26 = vadd.f32 %v3361_v56, %v3358_v55 }
 0x145   : > { %4072 = vst [vmem:[#allocation12_spill] sm:$0xff] %v3367_v8  ;;  %v800_v33 = vadd.f32 %v3367_v8, %v3364_v13 }
 0x147   : > { %v722_v37 = vpop.f32.mrb[40].mxu0  ;;  %v822_v44 = vpack.c.bf16 %v800_v33, %v799_v26  ;;  %v3391_v33 = vadd.f32 %v3175_v14, %v3162_v5 }
 0x148   : > { %v724_v18 = vpop.f32.mrb[41].mxu0  ;;  %v3374_v54 = vadd.f32 %v722_v37, %v3162_v5  ;;  %v3399_v37 = vadd.f32 %v3182_v17, %v3162_v5 }
 0x149   : > { %v3377_v53 = vadd.f32 %v724_v18, %v3164_v6  ;;  %v726_v59 = vpop.f32.mrb[42].mxu0  ;;  %2554 = vmatmul.mubr.bf16.gmra.mrb[32].mxu1 %v822_v44  ;;  %v3395_v18 = vadd.f32 %v3180_v16, %v3164_v6 }
 0x14a   : > { %4073 = vst [vmem:[#allocation13_spill] sm:$0xff] %v3374_v54  ;;  %v3380_v22 = vadd.f32 %v726_v59, %v3162_v5  ;;  %v728_v3 = vpop.f32.mrb[43].mxu0  ;;  %4078 = vst [vmem:[#allocation18_spill] sm:$0xff] %v3399_v37 }
 0x14b   : > { %4074 = vst [vmem:[#allocation14_spill] sm:$0xff] %v3377_v53  ;;  %v3383_v56 = vadd.f32 %v728_v3, %v3164_v6  ;;  %v801_v8 = vadd.f32 %v3377_v53, %v3374_v54  ;;  %4077 = vst [vmem:[#allocation17_spill] sm:$0xff] %v3395_v18  ;;  %v3403_v3 = vadd.f32 %v3188_v20, %v3164_v6 }
 0x14c   : > { %4075 = vst [vmem:[#allocation15_spill] sm:$0xff] %v3380_v22  ;;  %v805_v54 = vadd.f32 %v3395_v18, %v3391_v33 }
 0x14d   : > { %4076 = vst [vmem:[#allocation16_spill] sm:$0xff] %v3383_v56  ;;  %v802_v26 = vadd.f32 %v3383_v56, %v3380_v22  ;;  %4079 = vst [vmem:[#allocation19_spill] sm:$0xff] %v3403_v3  ;;  %v806_v20 = vadd.f32 %v3403_v3, %v3399_v37  ;;  %v3443_v37 = vadd.f32 %v3226_v45, %v3162_v5 }
 0x14f   : > { %v732_v44 = vpop.f32.mrb[44].mxu0  ;;  %v823_v59 = vpack.c.bf16 %v802_v26, %v801_v8  ;;  %v825_v18 = vpack.c.bf16 %v806_v20, %v805_v54  ;;  %v3474_v20 = vadd.f32 %v3261_v0, %v3164_v6 }
 0x150   : > { %v734_v53 = vpop.f32.mrb[45].mxu0  ;;  %v3406_v56 = vadd.f32 %v732_v44, %v3162_v5  ;;  %v3431_v44 = vadd.f32 %v3204_v31, %v3164_v6  ;;  %v3451_v31 = vadd.f32 %v3236_v49, %v3162_v5  ;;  %v2832_v49 = vld [vmem:[%s4034_s5 + $0x30] sm:$0xff]  }
 0x151   : > { %v3409_v14 = vadd.f32 %v734_v53, %v3164_v6  ;;  %v736_v22 = vpop.f32.mrb[46].mxu0  ;;  %2557 = vmatprep.mubr.bf16.mxu1 %v823_v59  ;;  %v3435_v59 = vadd.f32 %v3206_v32, %v3162_v5  ;;  %v3455_v32 = vadd.f32 %v3242_v52, %v3164_v6  ;;  %4083 = vst [vmem:[#allocation23_spill] sm:$0xff] %v3474_v20 }
 0x152   : > { %v3412_v16 = vadd.f32 %v736_v22, %v3162_v5  ;;  %v738_v17 = vpop.f32.mrb[47].mxu0  ;;  %v3427_v22 = vadd.f32 %v3199_v29, %v3162_v5  ;;  %v3447_v29 = vadd.f32 %v3231_v47, %v3164_v6  ;;  %4081 = vst [vmem:[#allocation21_spill] sm:$0xff] %v3451_v31  ;;  %2581 = vmatprep.subr.bf16.mxu1 %v2832_v49 }
 0x153   : > { %v3419_v8 = vadd.f32 %v738_v17, %v3164_v6  ;;  %v803_v26 = vadd.f32 %v3409_v14, %v3406_v56  ;;  %v3439_v17 = vadd.f32 %v3212_v35, %v3164_v6  ;;  %4082 = vst [vmem:[#allocation22_spill] sm:$0xff] %v3455_v32  ;;  %v810_v54 = vadd.f32 %v3455_v32, %v3451_v31 }
 0x154   : > { %4080 = vst [vmem:[#allocation20_spill] sm:$0xff] %v3447_v29  ;;  %v807_v35 = vadd.f32 %v3431_v44, %v3427_v22  ;;  %v809_v47 = vadd.f32 %v3447_v29, %v3443_v37  ;;  %2582 = vmatpush3.bf16.msra.mxu1 %v2832_v49 }
 0x155   : > { %v804_v53 = vadd.f32 %v3419_v8, %v3412_v16  ;;  %v808_v45 = vadd.f32 %v3439_v17, %v3435_v59 }
 0x157   : > { %v824_v3 = vpack.c.bf16 %v804_v53, %v803_v26  ;;  %v826_v52 = vpack.c.bf16 %v808_v45, %v807_v35  ;;  %v3482_v26 = vadd.f32 %v3272_v7, %v3164_v6  ;;  %v827_v53 = vpack.c.bf16 %v810_v54, %v809_v47  ;;  %v2834_v6 = vld [vmem:[%s4036_s7] sm:$0xff]   ;;  %v2835_v7 = vld [vmem:[%s4036_s7 + $0x8] sm:$0xff]   ;;  %v2836_v35 = vld [vmem:[%s4036_s7 + $0x10] sm:$0xff]  }
 0x158   : > { %2617 = vmatprep.subr.bf16.mxu0 %v2834_v6  ;;  %v2837_v45 = vld [vmem:[%s4036_s7 + $0x18] sm:$0xff]   ;;  %v2838_v47 = vld [vmem:[%s4036_s7 + $0x20] sm:$0xff]  }
 0x159   : > { %2558 = vmatmul.mubr.bf16.gmra.mrb[36].mxu1 %v824_v3  ;;  %v3470_v3 = vadd.f32 %v3256_v62, %v3162_v5  ;;  %4085 = vst [vmem:[#allocation25_spill] sm:$0xff] %v3482_v26  ;;  %v2833_v62 = vld [vmem:[%s4034_s5 + $0x38] sm:$0xff]   ;;  %2618 = vmatpush3.bf16.msra.mxu0 %v2834_v6  ;;  %v3509_v54 = vld [vmem:[%s4033_s4] ss:$0 sm:$0xff] }
 0x15a   : > { %2561 = vmatprep.mubr.bf16.mxu1 %v825_v18  ;;  %v3478_v18 = vadd.f32 %v3266_v2, %v3162_v5  ;;  %2583 = vmatprep.subr.bf16.mxu1 %v2833_v62 }
 0x15b   : > { %v811_v0 = vadd.f32 %v3474_v20, %v3470_v3  ;;  %2584 = vmatpush3.bf16.msra.mxu1 %v2833_v62  ;;  %2619 = vmatprep.subr.bf16.mxu0 %v2835_v7 }
 0x15c   : > { %4084 = vst [vmem:[#allocation24_spill] sm:$0xff] %v3478_v18  ;;  %v812_v5 = vadd.f32 %v3482_v26, %v3478_v18 }
 0x15d   : > { %2620 = vmatpush3.bf16.msra.mxu0 %v2835_v7 }
 0x15e   : > { %v828_v2 = vpack.c.bf16 %v812_v5, %v811_v0  ;;  %2621 = vmatprep.subr.bf16.mxu0 %v2836_v35 }
 0x161   : > { %2562 = vmatmul.mubr.bf16.gmra.mrb[40].mxu1 %v826_v52  ;;  %2622 = vmatpush3.bf16.msra.mxu0 %v2836_v35 }
 0x162   : > { %2565 = vmatprep.mubr.bf16.mxu1 %v827_v53  ;;  %2623 = vmatprep.subr.bf16.mxu0 %v2837_v45 }
 0x165   : > { %2624 = vmatpush3.bf16.msra.mxu0 %v2837_v45 }
 0x166   : > { %2625 = vmatprep.subr.bf16.mxu0 %v2838_v47 }
 0x169   : > { %2566 = vmatmul.mubr.bf16.gmra.mrb[44].mxu1 %v828_v2  ;;  %2626 = vmatpush3.bf16.msra.mxu0 %v2838_v47 }
 0x1dc   : > { %v2539_v49 = vpop.f32.mrb[16].mxu1 }
 0x1dd   : > { %v943_v52 = vadd.f32 %v2539_v49, %v3509_v54  ;;  %v934_v53 = vpop.f32.mrb[17].mxu1 }
 0x1de   : > { %v935_v62 = vadd.f32 %v3509_v54, %v934_v53  ;;  %v2540_v0 = vpop.f32.mrb[18].mxu1 }
 0x1df   : > { %v946_v5 = vadd.f32 %v2540_v0, %v3509_v54  ;;  %v937_v2 = vpop.f32.mrb[19].mxu1  ;;  %v1063_v7 = vmax.f32 %v943_v52, 0.0 }
 0x1e0   : > { %v938_v6 = vadd.f32 %v3509_v54, %v937_v2  ;;  %v1061_v45 = vmax.f32 %v935_v62, 0.0 }
 0x1e1   : > { %v1064_v35 = vmax.f32 %v946_v5, 0.0 }
 0x1e2   : > { %v1062_v20 = vmax.f32 %v938_v6, 0.0 }
 0x1e3   : > { %v1094_v32 = vpack.c.bf16 %v1064_v35, %v1063_v7 }
 0x1e4   : > { %v1093_v29 = vpack.c.bf16 %v1062_v20, %v1061_v45 }
 0x1e6   : > { %2585 = vmatprep.mubr.bf16.mxu1 %v1093_v29 }
 0x1e7   : > { %2586 = vmatmul.mubr.bf16.vlgmr.msra.gmra.mrb[48].mxu1 %v1094_v32 }
 0x1ec   : > { %v2543_v47 = vpop.f32.mrb[20].mxu1 }
 0x1ed   : > { %v959_v49 = vadd.f32 %v2543_v47, %v3509_v54  ;;  %v950_v26 = vpop.f32.mrb[21].mxu1 }
 0x1ee   : > { %v951_v53 = vadd.f32 %v3509_v54, %v950_v26  ;;  %v2544_v31 = vpop.f32.mrb[22].mxu1 }
 0x1ef   : > { %v962_v0 = vadd.f32 %v2544_v31, %v3509_v54  ;;  %v953_v18 = vpop.f32.mrb[23].mxu1  ;;  %v1067_v52 = vmax.f32 %v959_v49, 0.0 }
 0x1f0   : > { %v954_v2 = vadd.f32 %v3509_v54, %v953_v18  ;;  %v1065_v62 = vmax.f32 %v951_v53, 0.0 }
 0x1f1   : > { %v1068_v5 = vmax.f32 %v962_v0, 0.0 }
 0x1f2   : > { %v1066_v6 = vmax.f32 %v954_v2, 0.0 }
 0x1f3   : > { %v1096_v7 = vpack.c.bf16 %v1068_v5, %v1067_v52 }
 0x1f4   : > { %v1095_v20 = vpack.c.bf16 %v1066_v6, %v1065_v62 }
 0x1f6   : > { %2589 = vmatprep.mubr.bf16.mxu1 %v1095_v20 }
 0x1f7   : > { %2590 = vmatmul.mubr.bf16.gmra.mrb[52].mxu1 %v1096_v7 }
 0x1fc   : > { %v2547_v29 = vpop.f32.mrb[24].mxu1 }
 0x1fd   : > { %v975_v32 = vadd.f32 %v2547_v29, %v3509_v54  ;;  %v966_v35 = vpop.f32.mrb[25].mxu1 }
 0x1fe   : > { %v967_v26 = vadd.f32 %v3509_v54, %v966_v35  ;;  %v2548_v45 = vpop.f32.mrb[26].mxu1 }
 0x1ff   : > { %v978_v31 = vadd.f32 %v2548_v45, %v3509_v54  ;;  %v969_v47 = vpop.f32.mrb[27].mxu1  ;;  %v1071_v49 = vmax.f32 %v975_v32, 0.0 }
 0x200   : > { %v970_v18 = vadd.f32 %v3509_v54, %v969_v47  ;;  %v1069_v53 = vmax.f32 %v967_v26, 0.0 }
 0x201   : > { %v1072_v0 = vmax.f32 %v978_v31, 0.0 }
 0x202   : > { %v1070_v2 = vmax.f32 %v970_v18, 0.0 }
 0x203   : > { %v1098_v52 = vpack.c.bf16 %v1072_v0, %v1071_v49 }
 0x204   : > { %v1097_v5 = vpack.c.bf16 %v1070_v2, %v1069_v53 }
 0x206   : > { %2593 = vmatprep.mubr.bf16.mxu1 %v1097_v5 }
 0x207   : > { %2594 = vmatmul.mubr.bf16.gmra.mrb[56].mxu1 %v1098_v52 }
 0x20c   : > { %v2551_v62 = vpop.f32.mrb[28].mxu1 }
 0x20d   : > { %v991_v6 = vadd.f32 %v2551_v62, %v3509_v54  ;;  %v982_v7 = vpop.f32.mrb[29].mxu1 }
 0x20e   : > { %v983_v20 = vadd.f32 %v3509_v54, %v982_v7  ;;  %v2552_v29 = vpop.f32.mrb[30].mxu1 }
 0x20f   : > { %v994_v35 = vadd.f32 %v2552_v29, %v3509_v54  ;;  %v985_v45 = vpop.f32.mrb[31].mxu1  ;;  %v1075_v32 = vmax.f32 %v991_v6, 0.0 }
 0x210   : > { %v986_v47 = vadd.f32 %v3509_v54, %v985_v45  ;;  %v1073_v26 = vmax.f32 %v983_v20, 0.0 }
 0x211   : > { %v1076_v31 = vmax.f32 %v994_v35, 0.0 }
 0x212   : > { %v1074_v18 = vmax.f32 %v986_v47, 0.0 }
 0x213   : > { %v1100_v49 = vpack.c.bf16 %v1076_v31, %v1075_v32 }
 0x214   : > { %v1099_v0 = vpack.c.bf16 %v1074_v18, %v1073_v26 }
 0x216   : > { %2597 = vmatprep.mubr.bf16.mxu1 %v1099_v0 }
 0x217   : > { %2598 = vmatmul.mubr.bf16.gmra.mrb[60].mxu1 %v1100_v49 }
 0x21c   : > { %v2555_v53 = vpop.f32.mrb[32].mxu1 }
 0x21d   : > { %v1007_v2 = vadd.f32 %v2555_v53, %v3509_v54  ;;  %v998_v52 = vpop.f32.mrb[33].mxu1 }
 0x21e   : > { %v999_v5 = vadd.f32 %v3509_v54, %v998_v52  ;;  %v2556_v62 = vpop.f32.mrb[34].mxu1 }
 0x21f   : > { %v1010_v7 = vadd.f32 %v2556_v62, %v3509_v54  ;;  %v1001_v29 = vpop.f32.mrb[35].mxu1  ;;  %v1079_v6 = vmax.f32 %v1007_v2, 0.0 }
 0x220   : > { %v1002_v45 = vadd.f32 %v3509_v54, %v1001_v29  ;;  %v1077_v20 = vmax.f32 %v999_v5, 0.0 }
 0x221   : > { %v1080_v35 = vmax.f32 %v1010_v7, 0.0 }
 0x222   : > { %v1078_v47 = vmax.f32 %v1002_v45, 0.0 }
 0x223   : > { %v1102_v32 = vpack.c.bf16 %v1080_v35, %v1079_v6 }
 0x224   : > { %v1101_v31 = vpack.c.bf16 %v1078_v47, %v1077_v20 }
 0x226   : > { %2601 = vmatprep.mubr.bf16.mxu1 %v1101_v31 }
 0x227   : > { %2602 = vmatmul.mubr.bf16.gmra.mrb[64].mxu1 %v1102_v32 }
 0x22c   : > { %v2559_v26 = vpop.f32.mrb[36].mxu1 }
 0x22d   : > { %v1023_v18 = vadd.f32 %v2559_v26, %v3509_v54  ;;  %v1014_v49 = vpop.f32.mrb[37].mxu1 }
 0x22e   : > { %v1015_v0 = vadd.f32 %v3509_v54, %v1014_v49  ;;  %v2560_v53 = vpop.f32.mrb[38].mxu1 }
 0x22f   : > { %v1026_v52 = vadd.f32 %v2560_v53, %v3509_v54  ;;  %v1017_v62 = vpop.f32.mrb[39].mxu1  ;;  %v1083_v2 = vmax.f32 %v1023_v18, 0.0 }
 0x230   : > { %v1018_v29 = vadd.f32 %v3509_v54, %v1017_v62  ;;  %v1081_v5 = vmax.f32 %v1015_v0, 0.0  ;;  %v2839_v0 = vld [vmem:[%s4036_s7 + $0x28] sm:$0xff]  }
 0x231   : > { %v1084_v7 = vmax.f32 %v1026_v52, 0.0  ;;  %2627 = vmatprep.subr.bf16.mxu0 %v2839_v0 }
 0x232   : > { %v1082_v45 = vmax.f32 %v1018_v29, 0.0  ;;  %2628 = vmatpush3.bf16.msra.mxu0 %v2839_v0 }
 0x233   : > { %v1104_v6 = vpack.c.bf16 %v1084_v7, %v1083_v2 }
 0x234   : > { %v1103_v35 = vpack.c.bf16 %v1082_v45, %v1081_v5  ;;  %v2563_v20 = vpop.f32.mrb[40].mxu1 }
 0x235   : > { %v1039_v47 = vadd.f32 %v2563_v20, %v3509_v54  ;;  %v1030_v32 = vpop.f32.mrb[41].mxu1 }
 0x236   : > { %v1031_v31 = vadd.f32 %v3509_v54, %v1030_v32  ;;  %v2564_v26 = vpop.f32.mrb[42].mxu1  ;;  %2605 = vmatprep.mubr.bf16.mxu1 %v1103_v35 }
 0x237   : > { %v1042_v49 = vadd.f32 %v2564_v26, %v3509_v54  ;;  %v1033_v53 = vpop.f32.mrb[43].mxu1  ;;  %2606 = vmatmul.mubr.bf16.gmra.mrb[68].mxu1 %v1104_v6  ;;  %v1087_v18 = vmax.f32 %v1039_v47, 0.0  ;;  %v2840_v6 = vld [vmem:[%s4036_s7 + $0x30] sm:$0xff]  }
 0x238   : > { %v1034_v62 = vadd.f32 %v3509_v54, %v1033_v53  ;;  %v1085_v29 = vmax.f32 %v1031_v31, 0.0  ;;  %2629 = vmatprep.subr.bf16.mxu0 %v2840_v6 }
 0x239   : > { %v1088_v52 = vmax.f32 %v1042_v49, 0.0  ;;  %2630 = vmatpush3.bf16.msra.mxu0 %v2840_v6  ;;  %v3573_v6 = vld [vmem:[%s4035_s6] ss:$0 sm:$0xff] }
 0x23a   : > { %v1086_v2 = vmax.f32 %v1034_v62, 0.0 }
 0x23b   : > { %v1106_v7 = vpack.c.bf16 %v1088_v52, %v1087_v18  ;;  %v2841_v18 = vld [vmem:[%s4036_s7 + $0x38] sm:$0xff]  }
 0x23c   : > { %v1105_v5 = vpack.c.bf16 %v1086_v2, %v1085_v29  ;;  %v2567_v45 = vpop.f32.mrb[44].mxu1  ;;  %2631 = vmatprep.subr.bf16.mxu0 %v2841_v18 }
 0x23d   : > { %v1055_v35 = vadd.f32 %v2567_v45, %v3509_v54  ;;  %v1046_v20 = vpop.f32.mrb[45].mxu1  ;;  %2632 = vmatpush3.bf16.msra.mxu0 %v2841_v18  ;;  %v2845_v45 = vld [vmem:[%s4038_s9 + $0x18] sm:$0xff]  }
 0x23e   : > { %v1047_v47 = vadd.f32 %v3509_v54, %v1046_v20  ;;  %v2568_v32 = vpop.f32.mrb[46].mxu1  ;;  %2609 = vmatprep.mubr.bf16.mxu1 %v1105_v5  ;;  %v2844_v5 = vld [vmem:[%s4038_s9 + $0x10] sm:$0xff]   ;;  %v2847_v20 = vld [vmem:[%s4038_s9 + $0x28] sm:$0xff]  }
 0x23f   : > { %v1058_v26 = vadd.f32 %v2568_v32, %v3509_v54  ;;  %v1049_v31 = vpop.f32.mrb[47].mxu1  ;;  %2610 = vmatmul.mubr.bf16.gmra.mrb[72].mxu1 %v1106_v7  ;;  %v1091_v53 = vmax.f32 %v1055_v35, 0.0  ;;  %v2842_v7 = vld [vmem:[%s4038_s9] sm:$0xff]  }
 0x240   : > { %v1050_v49 = vadd.f32 %v3509_v54, %v1049_v31  ;;  %v1089_v52 = vmax.f32 %v1047_v47, 0.0  ;;  %v2843_v54 = vld [vmem:[%s4038_s9 + $0x8] sm:$0xff]   ;;  %2665 = vmatprep.subr.bf16.mxu1 %v2842_v7  ;;  %v2846_v35 = vld [vmem:[%s4038_s9 + $0x20] sm:$0xff]  }
 0x241   : > { %v1092_v62 = vmax.f32 %v1058_v26, 0.0  ;;  %2666 = vmatpush3.bf16.msra.mxu1 %v2842_v7 }
 0x242   : > { %v1090_v0 = vmax.f32 %v1050_v49, 0.0  ;;  %2667 = vmatprep.subr.bf16.mxu1 %v2843_v54 }
 0x243   : > { %v1108_v29 = vpack.c.bf16 %v1092_v62, %v1091_v53 }
 0x244   : > { %v1107_v2 = vpack.c.bf16 %v1090_v0, %v1089_v52 }
 0x245   : > { %2668 = vmatpush3.bf16.msra.mxu1 %v2843_v54 }
 0x246   : > { %2613 = vmatprep.mubr.bf16.mxu1 %v1107_v2  ;;  %2669 = vmatprep.subr.bf16.mxu1 %v2844_v5 }
 0x247   : > { %2614 = vmatmul.mubr.bf16.gmra.mrb[76].mxu1 %v1108_v29 }
 0x249   : > { %2670 = vmatpush3.bf16.msra.mxu1 %v2844_v5 }
 0x24a   : > { %2671 = vmatprep.subr.bf16.mxu1 %v2845_v45 }
 0x24d   : > { %2672 = vmatpush3.bf16.msra.mxu1 %v2845_v45 }
 0x24e   : > { %2673 = vmatprep.subr.bf16.mxu1 %v2846_v35 }
 0x251   : > { %2674 = vmatpush3.bf16.msra.mxu1 %v2846_v35 }
 0x252   : > { %2675 = vmatprep.subr.bf16.mxu1 %v2847_v20 }
 0x255   : > { %2676 = vmatpush3.bf16.msra.mxu1 %v2847_v20 }
 0x2ba   : > { %v2587_v47 = vpop.f32.mrb[48].mxu1 }
 0x2bb   : > { %v1223_v32 = vadd.f32 %v2587_v47, %v3573_v6  ;;  %v1214_v26 = vpop.f32.mrb[49].mxu1 }
 0x2bc   : > { %v1215_v31 = vadd.f32 %v3573_v6, %v1214_v26  ;;  %v2588_v49 = vpop.f32.mrb[50].mxu1 }
 0x2bd   : > { %v1226_v53 = vadd.f32 %v2588_v49, %v3573_v6  ;;  %v1217_v62 = vpop.f32.mrb[51].mxu1  ;;  %v3583_v0 = vadd.f32 %v1223_v32, %v3191_v24 }
 0x2be   : > { %v3579_v18 = vadd.f32 %v1215_v31, %v3167_v9  ;;  %v1218_v52 = vadd.f32 %v3573_v6, %v1217_v62 }
 0x2bf   : > { %v3586_v29 = vadd.f32 %v1226_v53, %v3197_v27  ;;  %v1375_v5 = vadd.f32 %v3583_v0, %v3194_v25 }
 0x2c0   : > { %v3589_v2 = vadd.f32 %v1218_v52, %v3173_v12  ;;  %v1373_v54 = vadd.f32 %v3579_v18, %v3170_v10 }
 0x2c1   : > { %v1376_v7 = vadd.f32 %v3586_v29, %v3202_v30 }
 0x2c2   : > { %v1374_v9 = vadd.f32 %v3589_v2, %v3178_v15 }
 0x2c3   : > { %v1406_v45 = vpack.c.bf16 %v1376_v7, %v1375_v5 }
 0x2c4   : > { %v1405_v24 = vpack.c.bf16 %v1374_v9, %v1373_v54 }
 0x2c6   : > { %2633 = vmatprep.mubr.bf16.mxu0 %v1405_v24 }
 0x2c7   : > { %2634 = vmatmul.mubr.bf16.vlgmr.msra.gmra.mrb[48].mxu0 %v1406_v45 }
 0x2ca   : > { %v2591_v27 = vpop.f32.mrb[52].mxu1 }
 0x2cb   : > { %v1239_v12 = vadd.f32 %v2591_v27, %v3573_v6  ;;  %v1230_v35 = vpop.f32.mrb[53].mxu1 }
 0x2cc   : > { %v1231_v20 = vadd.f32 %v3573_v6, %v1230_v35  ;;  %v2592_v30 = vpop.f32.mrb[54].mxu1 }
 0x2cd   : > { %v1242_v47 = vadd.f32 %v2592_v30, %v3573_v6  ;;  %v1233_v10 = vpop.f32.mrb[55].mxu1  ;;  %v3607_v25 = vadd.f32 %v1239_v12, %v3248_v57 }
 0x2ce   : > { %v3603_v32 = vadd.f32 %v1231_v20, %v3218_v40  ;;  %v1234_v15 = vadd.f32 %v3573_v6, %v1233_v10 }
 0x2cf   : > { %v3610_v26 = vadd.f32 %v1242_v47, %v3254_v60  ;;  %v1379_v62 = vadd.f32 %v3607_v25, %v3251_v58 }
 0x2d0   : > { %v3613_v31 = vadd.f32 %v1234_v15, %v3224_v43  ;;  %v1377_v53 = vadd.f32 %v3603_v32, %v3221_v41 }
 0x2d1   : > { %v1380_v49 = vadd.f32 %v3610_v26, %v3259_v63 }
 0x2d2   : > { %v1378_v40 = vadd.f32 %v3613_v31, %v3229_v46 }
 0x2d3   : > { %v1408_v52 = vpack.c.bf16 %v1380_v49, %v1379_v62 }
 0x2d4   : > { %v1407_v57 = vpack.c.bf16 %v1378_v40, %v1377_v53 }
 0x2d6   : > { %2637 = vmatprep.mubr.bf16.mxu0 %v1407_v57 }
 0x2d7   : > { %2638 = vmatmul.mubr.bf16.gmra.mrb[52].mxu0 %v1408_v52 }
 0x2da   : > { %v2595_v60 = vpop.f32.mrb[56].mxu1 }
 0x2db   : > { %v1255_v43 = vadd.f32 %v2595_v60, %v3573_v6  ;;  %v1246_v7 = vpop.f32.mrb[57].mxu1 }
 0x2dc   : > { %v1247_v54 = vadd.f32 %v3573_v6, %v1246_v7  ;;  %v2596_v63 = vpop.f32.mrb[58].mxu1 }
 0x2dd   : > { %v1258_v9 = vadd.f32 %v2596_v63, %v3573_v6  ;;  %v1249_v41 = vpop.f32.mrb[59].mxu1  ;;  %v3631_v58 = vadd.f32 %v1255_v43, %v3294_v39 }
 0x2de   : > { %v3627_v5 = vadd.f32 %v1247_v54, %v3278_v19  ;;  %v1250_v46 = vadd.f32 %v3573_v6, %v1249_v41  ;;  %v4086_v54 = vld [vmem:[#allocation7_spill] sm:$0xff]  ;;  %v4087_v41 = vld [vmem:[#allocation9_spill] sm:$0xff] }
 0x2df   : > { %v3634_v24 = vadd.f32 %v1258_v9, %v3300_v48  ;;  %v1383_v35 = vadd.f32 %v3631_v58, %v3297_v42 }
 0x2e0   : > { %v3637_v45 = vadd.f32 %v1250_v46, %v3284_v23  ;;  %v1381_v12 = vadd.f32 %v3627_v5, %v3281_v21 }
 0x2e1   : > { %v1384_v27 = vadd.f32 %v3634_v24, %v3303_v51 }
 0x2e2   : > { %v1382_v19 = vadd.f32 %v3637_v45, %v3287_v28 }
 0x2e3   : > { %v1410_v20 = vpack.c.bf16 %v1384_v27, %v1383_v35  ;;  %v4088_v27 = vld [vmem:[#allocation12_spill] sm:$0xff] }
 0x2e4   : > { %v1409_v39 = vpack.c.bf16 %v1382_v19, %v1381_v12  ;;  %v4089_v19 = vld [vmem:[#allocation8_spill] sm:$0xff] }
 0x2e6   : > { %2641 = vmatprep.mubr.bf16.mxu0 %v1409_v39  ;;  %v4090_v39 = vld [vmem:[#allocation10_spill] sm:$0xff] }
 0x2e7   : > { %2642 = vmatmul.mubr.bf16.gmra.mrb[56].mxu0 %v1410_v20 }
 0x2ea   : > { %v2599_v48 = vpop.f32.mrb[60].mxu1 }
 0x2eb   : > { %v1271_v23 = vadd.f32 %v2599_v48, %v3573_v6  ;;  %v1262_v30 = vpop.f32.mrb[61].mxu1  ;;  %v4091_v48 = vld [vmem:[#allocation11_spill] sm:$0xff] }
 0x2ec   : > { %v1263_v47 = vadd.f32 %v3573_v6, %v1262_v30  ;;  %v2600_v51 = vpop.f32.mrb[62].mxu1 }
 0x2ed   : > { %v1274_v10 = vadd.f32 %v2600_v51, %v3573_v6  ;;  %v1265_v21 = vpop.f32.mrb[63].mxu1  ;;  %v3655_v42 = vadd.f32 %v1271_v23, %v3326_v34 }
 0x2ee   : > { %v3651_v15 = vadd.f32 %v1263_v47, %v3310_v61  ;;  %v1266_v28 = vadd.f32 %v3573_v6, %v1265_v21 }
 0x2ef   : > { %v3658_v49 = vadd.f32 %v1274_v10, %v3332_v38  ;;  %v1387_v57 = vadd.f32 %v3655_v42, %v3329_v36 }
 0x2f0   : > { %v3661_v53 = vadd.f32 %v1266_v28, %v3316_v4  ;;  %v1385_v62 = vadd.f32 %v3651_v15, %v3313_v1 }
 0x2f1   : > { %v1388_v40 = vadd.f32 %v3658_v49, %v3335_v50 }
 0x2f2   : > { %v1386_v61 = vadd.f32 %v3661_v53, %v3319_v11 }
 0x2f3   : > { %v1412_v52 = vpack.c.bf16 %v1388_v40, %v1387_v57 }
 0x2f4   : > { %v1411_v34 = vpack.c.bf16 %v1386_v61, %v1385_v62  ;;  %v4092_v62 = vld [vmem:[#allocation13_spill] sm:$0xff] }
 0x2f6   : > { %2645 = vmatprep.mubr.bf16.mxu0 %v1411_v34 }
 0x2f7   : > { %2646 = vmatmul.mubr.bf16.gmra.mrb[60].mxu0 %v1412_v52 }
 0x2fa   : > { %v2603_v38 = vpop.f32.mrb[64].mxu1 }
 0x2fb   : > { %v1287_v4 = vadd.f32 %v2603_v38, %v3573_v6  ;;  %v1278_v60 = vpop.f32.mrb[65].mxu1  ;;  %v4093_v38 = vld [vmem:[#allocation15_spill] sm:$0xff] }
 0x2fc   : > { %v1279_v43 = vadd.f32 %v3573_v6, %v1278_v60  ;;  %v2604_v50 = vpop.f32.mrb[66].mxu1 }
 0x2fd   : > { %v1290_v7 = vadd.f32 %v2604_v50, %v3573_v6  ;;  %v1281_v1 = vpop.f32.mrb[67].mxu1  ;;  %v3679_v36 = vadd.f32 %v1287_v4, %v3358_v55 }
 0x2fe   : > { %v3675_v63 = vadd.f32 %v1279_v43, %v4086_v54  ;;  %v1282_v11 = vadd.f32 %v3573_v6, %v1281_v1  ;;  %v4094_v43 = vld [vmem:[#allocation14_spill] sm:$0xff] }
 0x2ff   : > { %v3682_v9 = vadd.f32 %v1290_v7, %v3364_v13  ;;  %v1391_v23 = vadd.f32 %v3679_v36, %v4091_v48  ;;  %v4095_v7 = vld [vmem:[#allocation16_spill] sm:$0xff] }
 0x300   : > { %v3685_v46 = vadd.f32 %v1282_v11, %v4087_v41  ;;  %v1389_v35 = vadd.f32 %v3675_v63, %v4089_v19 }
 0x301   : > { %v1392_v12 = vadd.f32 %v3682_v9, %v4088_v27 }
 0x302   : > { %v1390_v20 = vadd.f32 %v3685_v46, %v4090_v39 }
 0x303   : > { %v1414_v30 = vpack.c.bf16 %v1392_v12, %v1391_v23  ;;  %v4096_v23 = vld [vmem:[#allocation18_spill] sm:$0xff] }
 0x304   : > { %v1413_v55 = vpack.c.bf16 %v1390_v20, %v1389_v35 }
 0x306   : > { %2649 = vmatprep.mubr.bf16.mxu0 %v1413_v55 }
 0x307   : > { %2650 = vmatmul.mubr.bf16.gmra.mrb[64].mxu0 %v1414_v30 }
 0x30a   : > { %v2607_v13 = vpop.f32.mrb[68].mxu1 }
 0x30b   : > { %v1303_v47 = vadd.f32 %v2607_v13, %v3573_v6  ;;  %v1294_v51 = vpop.f32.mrb[69].mxu1  ;;  %v4097_v13 = vld [vmem:[#allocation17_spill] sm:$0xff] }
 0x30c   : > { %v1295_v10 = vadd.f32 %v3573_v6, %v1294_v51  ;;  %v2608_v21 = vpop.f32.mrb[70].mxu1 }
 0x30d   : > { %v1306_v28 = vadd.f32 %v2608_v21, %v3573_v6  ;;  %v1297_v40 = vpop.f32.mrb[71].mxu1  ;;  %v3703_v34 = vadd.f32 %v1303_v47, %v3406_v56  ;;  %v4098_v47 = vld [vmem:[#allocation19_spill] sm:$0xff] }
 0x30e   : > { %v3699_v61 = vadd.f32 %v1295_v10, %v4092_v62  ;;  %v1298_v57 = vadd.f32 %v3573_v6, %v1297_v40 }
 0x30f   : > { %v3706_v52 = vadd.f32 %v1306_v28, %v3412_v16  ;;  %v1395_v56 = vadd.f32 %v3703_v34, %v3409_v14  ;;  %v2848_v28 = vld [vmem:[%s4038_s9 + $0x30] sm:$0xff]  }
 0x310   : > { %v3709_v4 = vadd.f32 %v1298_v57, %v4093_v38  ;;  %v1393_v50 = vadd.f32 %v3699_v61, %v4094_v43  ;;  %2677 = vmatprep.subr.bf16.mxu1 %v2848_v28 }
 0x311   : > { %v1396_v60 = vadd.f32 %v3706_v52, %v3419_v8  ;;  %2678 = vmatpush3.bf16.msra.mxu1 %v2848_v28 }
 0x312   : > { %v1394_v1 = vadd.f32 %v3709_v4, %v4095_v7  ;;  %v2611_v54 = vpop.f32.mrb[72].mxu1  ;;  %v4099_v7 = vld [vmem:[#allocation24_spill] sm:$0xff] }
 0x313   : > { %v1319_v11 = vadd.f32 %v2611_v54, %v3573_v6  ;;  %v1310_v16 = vpop.f32.mrb[73].mxu1  ;;  %v1416_v35 = vpack.c.bf16 %v1396_v60, %v1395_v56  ;;  %v2849_v54 = vld [vmem:[%s4038_s9 + $0x38] sm:$0xff]   ;;  %v4100_v56 = vld [vmem:[#allocation21_spill] sm:$0xff] }
 0x314   : > { %v1311_v41 = vadd.f32 %v3573_v6, %v1310_v16  ;;  %v2612_v27 = vpop.f32.mrb[74].mxu1  ;;  %v1415_v12 = vpack.c.bf16 %v1394_v1, %v1393_v50  ;;  %2679 = vmatprep.subr.bf16.mxu1 %v2849_v54 }
 0x315   : > { %v1322_v19 = vadd.f32 %v2612_v27, %v3573_v6  ;;  %v1313_v8 = vpop.f32.mrb[75].mxu1  ;;  %v3727_v48 = vadd.f32 %v1319_v11, %v3427_v22  ;;  %2680 = vmatpush3.bf16.msra.mxu1 %v2849_v54 }
 0x316   : > { %v3723_v39 = vadd.f32 %v1311_v41, %v3391_v33  ;;  %v1314_v20 = vadd.f32 %v3573_v6, %v1313_v8  ;;  %2653 = vmatprep.mubr.bf16.mxu0 %v1415_v12  ;;  %v4104_v12 = vld [vmem:[#allocation23_spill] sm:$0xff] }
 0x317   : > { %v3730_v14 = vadd.f32 %v1322_v19, %v3435_v59  ;;  %2654 = vmatmul.mubr.bf16.gmra.mrb[68].mxu0 %v1416_v35  ;;  %v1399_v22 = vadd.f32 %v3727_v48, %v3431_v44 }
 0x318   : > { %v3733_v55 = vadd.f32 %v1314_v20, %v4096_v23  ;;  %v1397_v33 = vadd.f32 %v3723_v39, %v4097_v13  ;;  %v2850_v20 = vld [vmem:[%s4040_s11] sm:$0xff]   ;;  %v2851_v23 = vld [vmem:[%s4040_s11 + $0x8] sm:$0xff]   ;;  %v2853_v13 = vld [vmem:[%s4040_s11 + $0x18] sm:$0xff]  }
 0x319   : > { %v1400_v30 = vadd.f32 %v3730_v14, %v3439_v17  ;;  %2713 = vmatprep.subr.bf16.mxu0 %v2850_v20 }
 0x31a   : > { %v1398_v51 = vadd.f32 %v3733_v55, %v4098_v47  ;;  %v2615_v10 = vpop.f32.mrb[76].mxu1  ;;  %2714 = vmatpush3.bf16.msra.mxu0 %v2850_v20  ;;  %v2855_v47 = vld [vmem:[%s4040_s11 + $0x28] sm:$0xff]  }
 0x31b   : > { %v1335_v59 = vadd.f32 %v2615_v10, %v3573_v6  ;;  %v1326_v21 = vpop.f32.mrb[77].mxu1  ;;  %v1418_v60 = vpack.c.bf16 %v1400_v30, %v1399_v22  ;;  %2715 = vmatprep.subr.bf16.mxu0 %v2851_v23  ;;  %v2852_v30 = vld [vmem:[%s4040_s11 + $0x10] sm:$0xff]  }
 0x31c   : > { %v1327_v40 = vadd.f32 %v3573_v6, %v1326_v21  ;;  %v2616_v17 = vpop.f32.mrb[78].mxu1  ;;  %v1417_v62 = vpack.c.bf16 %v1398_v51, %v1397_v33  ;;  %v2854_v33 = vld [vmem:[%s4040_s11 + $0x20] sm:$0xff]  }
 0x31d   : > { %v1338_v57 = vadd.f32 %v2616_v17, %v3573_v6  ;;  %v1329_v38 = vpop.f32.mrb[79].mxu1  ;;  %v3754_v50 = vadd.f32 %v1335_v59, %v3470_v3  ;;  %v4103_v3 = vld [vmem:[#allocation22_spill] sm:$0xff]  ;;  %v3794_v51 = vld [vmem:[%s4037_s8] ss:$0 sm:$0xff] }
 0x31e   : > { %v3750_v43 = vadd.f32 %v1327_v40, %v3443_v37  ;;  %v1330_v44 = vadd.f32 %v3573_v6, %v1329_v38  ;;  %2657 = vmatprep.mubr.bf16.mxu0 %v1417_v62  ;;  %v4101_v37 = vld [vmem:[#allocation25_spill] sm:$0xff]  ;;  %v4102_v6 = vld [vmem:[#allocation20_spill] sm:$0xff]  ;;  %2716 = vmatpush3.bf16.msra.mxu0 %v2851_v23 }
 0x31f   : > { %v3757_v1 = vadd.f32 %v1338_v57, %v4099_v7  ;;  %2658 = vmatmul.mubr.bf16.gmra.mrb[72].mxu0 %v1418_v60  ;;  %v1403_v19 = vadd.f32 %v3754_v50, %v4104_v12  ;;  %2717 = vmatprep.subr.bf16.mxu0 %v2852_v30 }
 0x320   : > { %v3763_v11 = vadd.f32 %v1330_v44, %v4100_v56  ;;  %v1401_v41 = vadd.f32 %v3750_v43, %v4102_v6 }
 0x321   : > { %v1404_v16 = vadd.f32 %v3757_v1, %v4101_v37 }
 0x322   : > { %v1402_v27 = vadd.f32 %v3763_v11, %v4103_v3  ;;  %2718 = vmatpush3.bf16.msra.mxu0 %v2852_v30 }
 0x323   : > { %v1420_v35 = vpack.c.bf16 %v1404_v16, %v1403_v19  ;;  %2719 = vmatprep.subr.bf16.mxu0 %v2853_v13 }
 0x324   : > { %v1419_v8 = vpack.c.bf16 %v1402_v27, %v1401_v41 }
 0x326   : > { %2661 = vmatprep.mubr.bf16.mxu0 %v1419_v8  ;;  %2720 = vmatpush3.bf16.msra.mxu0 %v2853_v13 }
 0x327   : > { %2662 = vmatmul.mubr.bf16.gmra.mrb[76].mxu0 %v1420_v35  ;;  %2721 = vmatprep.subr.bf16.mxu0 %v2854_v33 }
 0x32a   : > { %2722 = vmatpush3.bf16.msra.mxu0 %v2854_v33 }
 0x32b   : > { %2723 = vmatprep.subr.bf16.mxu0 %v2855_v47 }
 0x32e   : > { %2724 = vmatpush3.bf16.msra.mxu0 %v2855_v47 }
 0x39a   : > { %v2635_v10 = vpop.f32.mrb[48].mxu0 }
 0x39b   : > { %v1535_v22 = vadd.f32 %v2635_v10, %v3794_v51  ;;  %v1526_v59 = vpop.f32.mrb[49].mxu0 }
 0x39c   : > { %v1527_v21 = vadd.f32 %v3794_v51, %v1526_v59  ;;  %v2636_v28 = vpop.f32.mrb[50].mxu0 }
 0x39d   : > { %v1538_v40 = vadd.f32 %v2636_v28, %v3794_v51  ;;  %v1529_v17 = vpop.f32.mrb[51].mxu0  ;;  %v1655_v57 = vmax.f32 %v1535_v22, 0.0 }
 0x39e   : > { %v1530_v62 = vadd.f32 %v3794_v51, %v1529_v17  ;;  %v1653_v60 = vmax.f32 %v1527_v21, 0.0 }
 0x39f   : > { %v1656_v38 = vmax.f32 %v1538_v40, 0.0 }
 0x3a0   : > { %v1654_v44 = vmax.f32 %v1530_v62, 0.0 }
 0x3a1   : > { %v1686_v7 = vpack.c.bf16 %v1656_v38, %v1655_v57 }
 0x3a2   : > { %v1685_v54 = vpack.c.bf16 %v1654_v44, %v1653_v60 }
 0x3a4   : > { %2681 = vmatprep.mubr.bf16.mxu1 %v1685_v54 }
 0x3a5   : > { %2682 = vmatmul.mubr.bf16.vlgmr.msra.gmra.mrb[80].mxu1 %v1686_v7 }
 0x3aa   : > { %v2639_v56 = vpop.f32.mrb[52].mxu0 }
 0x3ab   : > { %v1551_v37 = vadd.f32 %v2639_v56, %v3794_v51  ;;  %v1542_v16 = vpop.f32.mrb[53].mxu0 }
 0x3ac   : > { %v1543_v6 = vadd.f32 %v3794_v51, %v1542_v16  ;;  %v2640_v41 = vpop.f32.mrb[54].mxu0 }
 0x3ad   : > { %v1554_v3 = vadd.f32 %v2640_v41, %v3794_v51  ;;  %v1545_v27 = vpop.f32.mrb[55].mxu0  ;;  %v1659_v19 = vmax.f32 %v1551_v37, 0.0 }
 0x3ae   : > { %v1546_v12 = vadd.f32 %v3794_v51, %v1545_v27  ;;  %v1657_v35 = vmax.f32 %v1543_v6, 0.0 }
 0x3af   : > { %v1660_v8 = vmax.f32 %v1554_v3, 0.0 }
 0x3b0   : > { %v1658_v20 = vmax.f32 %v1546_v12, 0.0 }
 0x3b1   : > { %v1688_v23 = vpack.c.bf16 %v1660_v8, %v1659_v19 }
 0x3b2   : > { %v1687_v30 = vpack.c.bf16 %v1658_v20, %v1657_v35 }
 0x3b4   : > { %2685 = vmatprep.mubr.bf16.mxu1 %v1687_v30 }
 0x3b5   : > { %2686 = vmatmul.mubr.bf16.gmra.mrb[84].mxu1 %v1688_v23 }
 0x3ba   : > { %v2643_v13 = vpop.f32.mrb[56].mxu0 }
 0x3bb   : > { %v1567_v33 = vadd.f32 %v2643_v13, %v3794_v51  ;;  %v1558_v47 = vpop.f32.mrb[57].mxu0 }
 0x3bc   : > { %v1559_v10 = vadd.f32 %v3794_v51, %v1558_v47  ;;  %v2644_v22 = vpop.f32.mrb[58].mxu0 }
 0x3bd   : > { %v1570_v59 = vadd.f32 %v2644_v22, %v3794_v51  ;;  %v1561_v21 = vpop.f32.mrb[59].mxu0  ;;  %v1663_v40 = vmax.f32 %v1567_v33, 0.0 }
 0x3be   : > { %v1562_v28 = vadd.f32 %v3794_v51, %v1561_v21  ;;  %v1661_v62 = vmax.f32 %v1559_v10, 0.0 }
 0x3bf   : > { %v1664_v17 = vmax.f32 %v1570_v59, 0.0 }
 0x3c0   : > { %v1662_v57 = vmax.f32 %v1562_v28, 0.0 }
 0x3c1   : > { %v1690_v38 = vpack.c.bf16 %v1664_v17, %v1663_v40 }
 0x3c2   : > { %v1689_v60 = vpack.c.bf16 %v1662_v57, %v1661_v62 }
 0x3c4   : > { %2689 = vmatprep.mubr.bf16.mxu1 %v1689_v60 }
 0x3c5   : > { %2690 = vmatmul.mubr.bf16.gmra.mrb[88].mxu1 %v1690_v38 }
 0x3ca   : > { %v2647_v44 = vpop.f32.mrb[60].mxu0 }
 0x3cb   : > { %v1583_v7 = vadd.f32 %v2647_v44, %v3794_v51  ;;  %v1574_v54 = vpop.f32.mrb[61].mxu0 }
 0x3cc   : > { %v1575_v56 = vadd.f32 %v3794_v51, %v1574_v54  ;;  %v2648_v37 = vpop.f32.mrb[62].mxu0 }
 0x3cd   : > { %v1586_v16 = vadd.f32 %v2648_v37, %v3794_v51  ;;  %v1577_v6 = vpop.f32.mrb[63].mxu0  ;;  %v1667_v3 = vmax.f32 %v1583_v7, 0.0 }
 0x3ce   : > { %v1578_v41 = vadd.f32 %v3794_v51, %v1577_v6  ;;  %v1665_v12 = vmax.f32 %v1575_v56, 0.0 }
 0x3cf   : > { %v1668_v27 = vmax.f32 %v1586_v16, 0.0 }
 0x3d0   : > { %v1666_v19 = vmax.f32 %v1578_v41, 0.0 }
 0x3d1   : > { %v1692_v8 = vpack.c.bf16 %v1668_v27, %v1667_v3 }
 0x3d2   : > { %v1691_v35 = vpack.c.bf16 %v1666_v19, %v1665_v12 }
 0x3d4   : > { %2693 = vmatprep.mubr.bf16.mxu1 %v1691_v35 }
 0x3d5   : > { %2694 = vmatmul.mubr.bf16.gmra.mrb[92].mxu1 %v1692_v8 }
 0x3da   : > { %v2651_v20 = vpop.f32.mrb[64].mxu0 }
 0x3db   : > { %v1599_v23 = vadd.f32 %v2651_v20, %v3794_v51  ;;  %v1590_v30 = vpop.f32.mrb[65].mxu0 }
 0x3dc   : > { %v1591_v13 = vadd.f32 %v3794_v51, %v1590_v30  ;;  %v2652_v33 = vpop.f32.mrb[66].mxu0 }
 0x3dd   : > { %v1602_v47 = vadd.f32 %v2652_v33, %v3794_v51  ;;  %v1593_v10 = vpop.f32.mrb[67].mxu0  ;;  %v1671_v59 = vmax.f32 %v1599_v23, 0.0 }
 0x3de   : > { %v1594_v22 = vadd.f32 %v3794_v51, %v1593_v10  ;;  %v1669_v28 = vmax.f32 %v1591_v13, 0.0 }
 0x3df   : > { %v1672_v21 = vmax.f32 %v1602_v47, 0.0 }
 0x3e0   : > { %v1670_v40 = vmax.f32 %v1594_v22, 0.0 }
 0x3e1   : > { %v1694_v17 = vpack.c.bf16 %v1672_v21, %v1671_v59 }
 0x3e2   : > { %v1693_v62 = vpack.c.bf16 %v1670_v40, %v1669_v28  ;;  %v2856_v28 = vld [vmem:[%s4040_s11 + $0x30] sm:$0xff]  }
 0x3e3   : > { %2725 = vmatprep.subr.bf16.mxu0 %v2856_v28 }
 0x3e4   : > { %2697 = vmatprep.mubr.bf16.mxu1 %v1693_v62  ;;  %2726 = vmatpush3.bf16.msra.mxu0 %v2856_v28 }
 0x3e5   : > { %2698 = vmatmul.mubr.bf16.gmra.mrb[96].mxu1 %v1694_v17 }
 0x3ea   : > { %v2655_v57 = vpop.f32.mrb[68].mxu0 }
 0x3eb   : > { %v1615_v38 = vadd.f32 %v2655_v57, %v3794_v51  ;;  %v1606_v60 = vpop.f32.mrb[69].mxu0 }
 0x3ec   : > { %v1607_v44 = vadd.f32 %v3794_v51, %v1606_v60  ;;  %v2656_v7 = vpop.f32.mrb[70].mxu0 }
 0x3ed   : > { %v1618_v54 = vadd.f32 %v2656_v7, %v3794_v51  ;;  %v1609_v56 = vpop.f32.mrb[71].mxu0  ;;  %v1675_v16 = vmax.f32 %v1615_v38, 0.0 }
 0x3ee   : > { %v1610_v37 = vadd.f32 %v3794_v51, %v1609_v56  ;;  %v1673_v41 = vmax.f32 %v1607_v44, 0.0 }
 0x3ef   : > { %v1676_v6 = vmax.f32 %v1618_v54, 0.0  ;;  %v2857_v54 = vld [vmem:[%s4040_s11 + $0x38] sm:$0xff]  }
 0x3f0   : > { %v1674_v3 = vmax.f32 %v1610_v37, 0.0  ;;  %2727 = vmatprep.subr.bf16.mxu0 %v2857_v54 }
 0x3f1   : > { %v1696_v27 = vpack.c.bf16 %v1676_v6, %v1675_v16  ;;  %2728 = vmatpush3.bf16.msra.mxu0 %v2857_v54 }
 0x3f2   : > { %v1695_v12 = vpack.c.bf16 %v1674_v3, %v1673_v41  ;;  %v2659_v19 = vpop.f32.mrb[72].mxu0 }
 0x3f3   : > { %v1631_v8 = vadd.f32 %v2659_v19, %v3794_v51  ;;  %v1622_v35 = vpop.f32.mrb[73].mxu0 }
 0x3f4   : > { %v1623_v20 = vadd.f32 %v3794_v51, %v1622_v35  ;;  %v2660_v23 = vpop.f32.mrb[74].mxu0  ;;  %2701 = vmatprep.mubr.bf16.mxu1 %v1695_v12  ;;  %v3837_v12 = vld [vmem:[%s4039_s10] ss:$0 sm:$0xff] }
 0x3f5   : > { %v1634_v30 = vadd.f32 %v2660_v23, %v3794_v51  ;;  %v1625_v13 = vpop.f32.mrb[75].mxu0  ;;  %2702 = vmatmul.mubr.bf16.gmra.mrb[100].mxu1 %v1696_v27  ;;  %v1679_v47 = vmax.f32 %v1631_v8, 0.0 }
 0x3f6   : > { %v1626_v33 = vadd.f32 %v3794_v51, %v1625_v13  ;;  %v1677_v22 = vmax.f32 %v1623_v20, 0.0 }
 0x3f7   : > { %v1680_v10 = vmax.f32 %v1634_v30, 0.0 }
 0x3f8   : > { %v1678_v59 = vmax.f32 %v1626_v33, 0.0 }
 0x3f9   : > { %v1698_v21 = vpack.c.bf16 %v1680_v10, %v1679_v47 }
 0x3fa   : > { %v1697_v40 = vpack.c.bf16 %v1678_v59, %v1677_v22  ;;  %v2663_v17 = vpop.f32.mrb[76].mxu0 }
 0x3fb   : > { %v1647_v62 = vadd.f32 %v2663_v17, %v3794_v51  ;;  %v1638_v57 = vpop.f32.mrb[77].mxu0 }
 0x3fc   : > { %v1639_v38 = vadd.f32 %v3794_v51, %v1638_v57  ;;  %v2664_v60 = vpop.f32.mrb[78].mxu0  ;;  %2705 = vmatprep.mubr.bf16.mxu1 %v1697_v40 }
 0x3fd   : > { %v1650_v44 = vadd.f32 %v2664_v60, %v3794_v51  ;;  %v1641_v7 = vpop.f32.mrb[79].mxu0  ;;  %2706 = vmatmul.mubr.bf16.gmra.mrb[104].mxu1 %v1698_v21  ;;  %v1683_v37 = vmax.f32 %v1647_v62, 0.0 }
 0x3fe   : > { %v1642_v56 = vadd.f32 %v3794_v51, %v1641_v7  ;;  %v1681_v6 = vmax.f32 %v1639_v38, 0.0 }
 0x3ff   : > { %v1684_v16 = vmax.f32 %v1650_v44, 0.0 }
 0x400   : > { %v1682_v41 = vmax.f32 %v1642_v56, 0.0 }
 0x401   : > { %v1700_v3 = vpack.c.bf16 %v1684_v16, %v1683_v37 }
 0x402   : > { %v1699_v27 = vpack.c.bf16 %v1682_v41, %v1681_v6 }
 0x404   : > { %2709 = vmatprep.mubr.bf16.mxu1 %v1699_v27 }
 0x405   : > { %2710 = vmatmul.mubr.bf16.gmra.mrb[108].mxu1 %v1700_v3 }
 0x478   : > { %v2683_v19 = vpop.f32.mrb[80].mxu1 }
 0x479   : > { %v1815_v8 = vadd.f32 %v2683_v19, %v3837_v12  ;;  %v1806_v35 = vpop.f32.mrb[81].mxu1 }
 0x47a   : > { %v1807_v51 = vadd.f32 %v3837_v12, %v1806_v35  ;;  %v2684_v20 = vpop.f32.mrb[82].mxu1 }
 0x47b   : > { %v1818_v23 = vadd.f32 %v2684_v20, %v3837_v12  ;;  %v1809_v30 = vpop.f32.mrb[83].mxu1  ;;  %v1935_v33 = vadd.f32 %v1815_v8, %v3583_v0 }
 0x47c   : > { %v1810_v13 = vadd.f32 %v3837_v12, %v1809_v30  ;;  %v1933_v10 = vadd.f32 %v1807_v51, %v3579_v18 }
 0x47d   : > { %v1936_v47 = vadd.f32 %v1818_v23, %v3586_v29 }
 0x47e   : > { %v1934_v22 = vadd.f32 %v1810_v13, %v3589_v2 }
 0x47f   : > { %v1966_v59 = vpack.c.bf16 %v1936_v47, %v1935_v33 }
 0x480   : > { %v1965_v21 = vpack.c.bf16 %v1934_v22, %v1933_v10 }
 0x482   : > { %2729 = vmatprep.mubr.bf16.mxu0 %v1965_v21 }
 0x483   : > { %2730 = vmatmul.mubr.bf16.vlgmr.msra.gmra.mrb[80].mxu0 %v1966_v59 }
 0x488   : > { %v2687_v28 = vpop.f32.mrb[84].mxu1 }
 0x489   : > { %v1831_v40 = vadd.f32 %v2687_v28, %v3837_v12  ;;  %v1822_v17 = vpop.f32.mrb[85].mxu1 }
 0x48a   : > { %v1823_v62 = vadd.f32 %v3837_v12, %v1822_v17  ;;  %v2688_v57 = vpop.f32.mrb[86].mxu1 }
 0x48b   : > { %v1834_v38 = vadd.f32 %v2688_v57, %v3837_v12  ;;  %v1825_v0 = vpop.f32.mrb[87].mxu1  ;;  %v1939_v18 = vadd.f32 %v1831_v40, %v3607_v25 }
 0x48c   : > { %v1826_v29 = vadd.f32 %v3837_v12, %v1825_v0  ;;  %v1937_v60 = vadd.f32 %v1823_v62, %v3603_v32 }
 0x48d   : > { %v1940_v2 = vadd.f32 %v1834_v38, %v3610_v26 }
 0x48e   : > { %v1938_v44 = vadd.f32 %v1826_v29, %v3613_v31 }
 0x48f   : > { %v1968_v7 = vpack.c.bf16 %v1940_v2, %v1939_v18 }
 0x490   : > { %v1967_v54 = vpack.c.bf16 %v1938_v44, %v1937_v60 }
 0x492   : > { %2733 = vmatprep.mubr.bf16.mxu0 %v1967_v54 }
 0x493   : > { %2734 = vmatmul.mubr.bf16.gmra.mrb[84].mxu0 %v1968_v7 }
 0x498   : > { %v2691_v56 = vpop.f32.mrb[88].mxu1 }
 0x499   : > { %v1847_v37 = vadd.f32 %v2691_v56, %v3837_v12  ;;  %v1838_v16 = vpop.f32.mrb[89].mxu1 }
 0x49a   : > { %v1839_v6 = vadd.f32 %v3837_v12, %v1838_v16  ;;  %v2692_v41 = vpop.f32.mrb[90].mxu1 }
 0x49b   : > { %v1850_v3 = vadd.f32 %v2692_v41, %v3837_v12  ;;  %v1841_v25 = vpop.f32.mrb[91].mxu1  ;;  %v1943_v32 = vadd.f32 %v1847_v37, %v3631_v58 }
 0x49c   : > { %v1842_v26 = vadd.f32 %v3837_v12, %v1841_v25  ;;  %v1941_v27 = vadd.f32 %v1839_v6, %v3627_v5 }
 0x49d   : > { %v1944_v31 = vadd.f32 %v1850_v3, %v3634_v24 }
 0x49e   : > { %v1942_v19 = vadd.f32 %v1842_v26, %v3637_v45 }
 0x49f   : > { %v1970_v8 = vpack.c.bf16 %v1944_v31, %v1943_v32 }
 0x4a0   : > { %v1969_v35 = vpack.c.bf16 %v1942_v19, %v1941_v27 }
 0x4a2   : > { %2737 = vmatprep.mubr.bf16.mxu0 %v1969_v35 }
 0x4a3   : > { %2738 = vmatmul.mubr.bf16.gmra.mrb[88].mxu0 %v1970_v8 }
 0x4a8   : > { %v2695_v51 = vpop.f32.mrb[92].mxu1 }
 0x4a9   : > { %v1863_v20 = vadd.f32 %v2695_v51, %v3837_v12  ;;  %v1854_v23 = vpop.f32.mrb[93].mxu1 }
 0x4aa   : > { %v1855_v30 = vadd.f32 %v3837_v12, %v1854_v23  ;;  %v2696_v13 = vpop.f32.mrb[94].mxu1 }
 0x4ab   : > { %v1866_v33 = vadd.f32 %v2696_v13, %v3837_v12  ;;  %v1857_v58 = vpop.f32.mrb[95].mxu1  ;;  %v1947_v5 = vadd.f32 %v1863_v20, %v3655_v42 }
 0x4ac   : > { %v1858_v24 = vadd.f32 %v3837_v12, %v1857_v58  ;;  %v1945_v47 = vadd.f32 %v1855_v30, %v3651_v15 }
 0x4ad   : > { %v1948_v45 = vadd.f32 %v1866_v33, %v3658_v49 }
 0x4ae   : > { %v1946_v10 = vadd.f32 %v1858_v24, %v3661_v53 }
 0x4af   : > { %v1972_v22 = vpack.c.bf16 %v1948_v45, %v1947_v5 }
 0x4b0   : > { %v1971_v59 = vpack.c.bf16 %v1946_v10, %v1945_v47  ;;  %v3909_v10 = vld [vmem:[%s4041_s12] ss:$0 sm:$0xff] }
 0x4b2   : > { %2741 = vmatprep.mubr.bf16.mxu0 %v1971_v59 }
 0x4b3   : > { %2742 = vmatmul.mubr.bf16.gmra.mrb[92].mxu0 %v1972_v22 }
 0x4b8   : > { %v2699_v21 = vpop.f32.mrb[96].mxu1 }
 0x4b9   : > { %v1879_v28 = vadd.f32 %v2699_v21, %v3837_v12  ;;  %v1870_v40 = vpop.f32.mrb[97].mxu1 }
 0x4ba   : > { %v1871_v17 = vadd.f32 %v3837_v12, %v1870_v40  ;;  %v2700_v62 = vpop.f32.mrb[98].mxu1 }
 0x4bb   : > { %v1882_v57 = vadd.f32 %v2700_v62, %v3837_v12  ;;  %v1873_v42 = vpop.f32.mrb[99].mxu1  ;;  %v1951_v15 = vadd.f32 %v1879_v28, %v3679_v36 }
 0x4bc   : > { %v1874_v49 = vadd.f32 %v3837_v12, %v1873_v42  ;;  %v1949_v38 = vadd.f32 %v1871_v17, %v3675_v63 }
 0x4bd   : > { %v1952_v53 = vadd.f32 %v1882_v57, %v3682_v9 }
 0x4be   : > { %v1950_v0 = vadd.f32 %v1874_v49, %v3685_v46 }
 0x4bf   : > { %v1974_v29 = vpack.c.bf16 %v1952_v53, %v1951_v15 }
 0x4c0   : > { %v1973_v18 = vpack.c.bf16 %v1950_v0, %v1949_v38 }
 0x4c2   : > { %2745 = vmatprep.mubr.bf16.mxu0 %v1973_v18 }
 0x4c3   : > { %2746 = vmatmul.mubr.bf16.gmra.mrb[96].mxu0 %v1974_v29 }
 0x4c8   : > { %v2703_v2 = vpop.f32.mrb[100].mxu1 }
 0x4c9   : > { %v1895_v60 = vadd.f32 %v2703_v2, %v3837_v12  ;;  %v1886_v44 = vpop.f32.mrb[101].mxu1 }
 0x4ca   : > { %v1887_v7 = vadd.f32 %v3837_v12, %v1886_v44  ;;  %v2704_v54 = vpop.f32.mrb[102].mxu1 }
 0x4cb   : > { %v1898_v56 = vadd.f32 %v2704_v54, %v3837_v12  ;;  %v1889_v36 = vpop.f32.mrb[103].mxu1  ;;  %v1955_v63 = vadd.f32 %v1895_v60, %v3703_v34 }
 0x4cc   : > { %v1890_v9 = vadd.f32 %v3837_v12, %v1889_v36  ;;  %v1953_v37 = vadd.f32 %v1887_v7, %v3699_v61 }
 0x4cd   : > { %v1956_v46 = vadd.f32 %v1898_v56, %v3706_v52 }
 0x4ce   : > { %v1954_v16 = vadd.f32 %v1890_v9, %v3709_v4 }
 0x4cf   : > { %v1976_v6 = vpack.c.bf16 %v1956_v46, %v1955_v63 }
 0x4d0   : > { %v2707_v41 = vpop.f32.mrb[104].mxu1  ;;  %v1975_v3 = vpack.c.bf16 %v1954_v16, %v1953_v37 }
 0x4d1   : > { %v1911_v25 = vadd.f32 %v2707_v41, %v3837_v12  ;;  %v1902_v26 = vpop.f32.mrb[105].mxu1 }
 0x4d2   : > { %v1903_v32 = vadd.f32 %v3837_v12, %v1902_v26  ;;  %v2708_v31 = vpop.f32.mrb[106].mxu1  ;;  %2749 = vmatprep.mubr.bf16.mxu0 %v1975_v3 }
 0x4d3   : > { %v1914_v27 = vadd.f32 %v2708_v31, %v3837_v12  ;;  %v1905_v19 = vpop.f32.mrb[107].mxu1  ;;  %2750 = vmatmul.mubr.bf16.gmra.mrb[100].mxu0 %v1976_v6  ;;  %v1959_v61 = vadd.f32 %v1911_v25, %v3727_v48 }
 0x4d4   : > { %v1906_v34 = vadd.f32 %v3837_v12, %v1905_v19  ;;  %v1957_v4 = vadd.f32 %v1903_v32, %v3723_v39 }
 0x4d5   : > { %v1960_v52 = vadd.f32 %v1914_v27, %v3730_v14 }
 0x4d6   : > { %v1958_v8 = vadd.f32 %v1906_v34, %v3733_v55 }
 0x4d7   : > { %v1978_v35 = vpack.c.bf16 %v1960_v52, %v1959_v61 }
 0x4d8   : > { %v2711_v51 = vpop.f32.mrb[108].mxu1  ;;  %v1977_v20 = vpack.c.bf16 %v1958_v8, %v1957_v4 }
 0x4d9   : > { %v1927_v23 = vadd.f32 %v2711_v51, %v3837_v12  ;;  %v1918_v30 = vpop.f32.mrb[109].mxu1 }
 0x4da   : > { %v1919_v13 = vadd.f32 %v3837_v12, %v1918_v30  ;;  %v2712_v33 = vpop.f32.mrb[110].mxu1  ;;  %2753 = vmatprep.mubr.bf16.mxu0 %v1977_v20 }
 0x4db   : > { %v1930_v48 = vadd.f32 %v2712_v33, %v3837_v12  ;;  %v1921_v58 = vpop.f32.mrb[111].mxu1  ;;  %2754 = vmatmul.mubr.bf16.gmra.mrb[104].mxu0 %v1978_v35  ;;  %v1963_v14 = vadd.f32 %v1927_v23, %v3754_v50 }
 0x4dc   : > { %v1922_v39 = vadd.f32 %v3837_v12, %v1921_v58  ;;  %v1961_v24 = vadd.f32 %v1919_v13, %v3750_v43 }
 0x4dd   : > { %v1964_v55 = vadd.f32 %v1930_v48, %v3757_v1 }
 0x4de   : > { %v1962_v5 = vadd.f32 %v1922_v39, %v3763_v11 }
 0x4df   : > { %v1980_v45 = vpack.c.bf16 %v1964_v55, %v1963_v14 }
 0x4e0   : > { %v1979_v47 = vpack.c.bf16 %v1962_v5, %v1961_v24 }
 0x4e2   : > { %2757 = vmatprep.mubr.bf16.mxu0 %v1979_v47 }
 0x4e3   : > { %2758 = vmatmul.mubr.bf16.gmra.mrb[108].mxu0 %v1980_v45 }
 0x556   : > { %v2731_v12 = vpop.f32.mrb[80].mxu0 }
 0x557   : > { %v2095_v50 = vadd.f32 %v2731_v12, %v3909_v10  ;;  %v2086_v1 = vpop.f32.mrb[81].mxu0 }
 0x558   : > { %v2087_v43 = vadd.f32 %v3909_v10, %v2086_v1  ;;  %v2732_v22 = vpop.f32.mrb[82].mxu0 }
 0x559   : > { %2215 = vst [vmem:[%s3913_s30 + $0x10] sm:$0xff] %v2095_v50  ;;  %v2098_v11 = vadd.f32 %v2732_v22, %v3909_v10  ;;  %v2089_v59 = vpop.f32.mrb[83].mxu0 }
 0x55a   : > { %2213 = vst [vmem:[%s3913_s30] sm:$0xff] %v2087_v43  ;;  %v2090_v21 = vadd.f32 %v3909_v10, %v2089_v59 }
 0x55b   : > { %2216 = vst [vmem:[%s3913_s30 + $0x18] sm:$0xff] %v2098_v11 }
 0x55c   : > { %2214 = vst [vmem:[%s3913_s30 + $0x8] sm:$0xff] %v2090_v21 }
 0x566   : > { %v2735_v28 = vpop.f32.mrb[84].mxu0 }
 0x567   : > { %v2111_v40 = vadd.f32 %v2735_v28, %v3909_v10  ;;  %v2102_v17 = vpop.f32.mrb[85].mxu0 }
 0x568   : > { %v2103_v62 = vadd.f32 %v3909_v10, %v2102_v17  ;;  %v2736_v57 = vpop.f32.mrb[86].mxu0 }
 0x569   : > { %2219 = vst [vmem:[%s3913_s30 + $0x30] sm:$0xff] %v2111_v40  ;;  %v2114_v42 = vadd.f32 %v2736_v57, %v3909_v10  ;;  %v2105_v49 = vpop.f32.mrb[87].mxu0 }
 0x56a   : > { %2217 = vst [vmem:[%s3913_s30 + $0x20] sm:$0xff] %v2103_v62  ;;  %v2106_v15 = vadd.f32 %v3909_v10, %v2105_v49 }
 0x56b   : > { %2220 = vst [vmem:[%s3913_s30 + $0x38] sm:$0xff] %v2114_v42 }
 0x56c   : > { %2218 = vst [vmem:[%s3913_s30 + $0x28] sm:$0xff] %v2106_v15 }
 0x576   : > { %v2739_v53 = vpop.f32.mrb[88].mxu0 }
 0x577   : > { %v2127_v38 = vadd.f32 %v2739_v53, %v3909_v10  ;;  %v2118_v0 = vpop.f32.mrb[89].mxu0 }
 0x578   : > { %v2119_v29 = vadd.f32 %v3909_v10, %v2118_v0  ;;  %v2740_v18 = vpop.f32.mrb[90].mxu0 }
 0x579   : > { %2223 = vst [vmem:[%s3913_s30 + $0x50] sm:$0xff] %v2127_v38  ;;  %v2130_v2 = vadd.f32 %v2740_v18, %v3909_v10  ;;  %v2121_v60 = vpop.f32.mrb[91].mxu0 }
 0x57a   : > { %2221 = vst [vmem:[%s3913_s30 + $0x40] sm:$0xff] %v2119_v29  ;;  %v2122_v44 = vadd.f32 %v3909_v10, %v2121_v60 }
 0x57b   : > { %2224 = vst [vmem:[%s3913_s30 + $0x58] sm:$0xff] %v2130_v2 }
 0x57c   : > { %2222 = vst [vmem:[%s3913_s30 + $0x48] sm:$0xff] %v2122_v44 }
 0x586   : > { %v2743_v7 = vpop.f32.mrb[92].mxu0 }
 0x587   : > { %v2143_v54 = vadd.f32 %v2743_v7, %v3909_v10  ;;  %v2134_v56 = vpop.f32.mrb[93].mxu0 }
 0x588   : > { %v2135_v36 = vadd.f32 %v3909_v10, %v2134_v56  ;;  %v2744_v9 = vpop.f32.mrb[94].mxu0 }
 0x589   : > { %2227 = vst [vmem:[%s3913_s30 + $0x70] sm:$0xff] %v2143_v54  ;;  %v2146_v63 = vadd.f32 %v2744_v9, %v3909_v10  ;;  %v2137_v46 = vpop.f32.mrb[95].mxu0 }
 0x58a   : > { %2225 = vst [vmem:[%s3913_s30 + $0x60] sm:$0xff] %v2135_v36  ;;  %v2138_v37 = vadd.f32 %v3909_v10, %v2137_v46 }
 0x58b   : > { %2228 = vst [vmem:[%s3913_s30 + $0x78] sm:$0xff] %v2146_v63 }
 0x58c   : > { %2226 = vst [vmem:[%s3913_s30 + $0x68] sm:$0xff] %v2138_v37 }
 0x596   : > { %v2747_v16 = vpop.f32.mrb[96].mxu0 }
 0x597   : > { %v2159_v6 = vadd.f32 %v2747_v16, %v3909_v10  ;;  %v2150_v41 = vpop.f32.mrb[97].mxu0 }
 0x598   : > { %v2151_v3 = vadd.f32 %v3909_v10, %v2150_v41  ;;  %v2748_v25 = vpop.f32.mrb[98].mxu0 }
 0x599   : > { %2231 = vst [vmem:[%s3913_s30 + $0x90] sm:$0xff] %v2159_v6  ;;  %v2162_v26 = vadd.f32 %v2748_v25, %v3909_v10  ;;  %v2153_v32 = vpop.f32.mrb[99].mxu0 }
 0x59a   : > { %2229 = vst [vmem:[%s3913_s30 + $0x80] sm:$0xff] %v2151_v3  ;;  %v2154_v31 = vadd.f32 %v3909_v10, %v2153_v32 }
 0x59b   : > { %2232 = vst [vmem:[%s3913_s30 + $0x98] sm:$0xff] %v2162_v26 }
 0x59c   : > { %2230 = vst [vmem:[%s3913_s30 + $0x88] sm:$0xff] %v2154_v31 }
 0x5a6   : > { %v2751_v27 = vpop.f32.mrb[100].mxu0 }
 0x5a7   : > { %v2175_v19 = vadd.f32 %v2751_v27, %v3909_v10  ;;  %v2166_v34 = vpop.f32.mrb[101].mxu0 }
 0x5a8   : > { %v2167_v61 = vadd.f32 %v3909_v10, %v2166_v34  ;;  %v2752_v52 = vpop.f32.mrb[102].mxu0 }
 0x5a9   : > { %2235 = vst [vmem:[%s3913_s30 + $0xb0] sm:$0xff] %v2175_v19  ;;  %v2178_v4 = vadd.f32 %v2752_v52, %v3909_v10  ;;  %v2169_v8 = vpop.f32.mrb[103].mxu0 }
 0x5aa   : > { %2233 = vst [vmem:[%s3913_s30 + $0xa0] sm:$0xff] %v2167_v61  ;;  %v2170_v35 = vadd.f32 %v3909_v10, %v2169_v8 }
 0x5ab   : > { %2236 = vst [vmem:[%s3913_s30 + $0xb8] sm:$0xff] %v2178_v4 }
 0x5ac   : > { %2234 = vst [vmem:[%s3913_s30 + $0xa8] sm:$0xff] %v2170_v35 }
 0x5ae   : > { %v2755_v51 = vpop.f32.mrb[104].mxu0 }
 0x5af   : > { %v2191_v20 = vadd.f32 %v2755_v51, %v3909_v10  ;;  %v2182_v23 = vpop.f32.mrb[105].mxu0 }
 0x5b0   : > { %v2183_v30 = vadd.f32 %v3909_v10, %v2182_v23  ;;  %v2756_v13 = vpop.f32.mrb[106].mxu0 }
 0x5b1   : > { %2239 = vst [vmem:[%s3913_s30 + $0xd0] sm:$0xff] %v2191_v20  ;;  %v2194_v33 = vadd.f32 %v2756_v13, %v3909_v10  ;;  %v2185_v48 = vpop.f32.mrb[107].mxu0 }
 0x5b2   : > { %2237 = vst [vmem:[%s3913_s30 + $0xc0] sm:$0xff] %v2183_v30  ;;  %v2186_v58 = vadd.f32 %v3909_v10, %v2185_v48 }
 0x5b3   : > { %2240 = vst [vmem:[%s3913_s30 + $0xd8] sm:$0xff] %v2194_v33 }
 0x5b4   : > { %2238 = vst [vmem:[%s3913_s30 + $0xc8] sm:$0xff] %v2186_v58 }
 0x5b6   : > { %v2759_v39 = vpop.f32.mrb[108].mxu0 }
 0x5b7   : > { %v2207_v14 = vadd.f32 %v2759_v39, %v3909_v10  ;;  %v2198_v55 = vpop.f32.mrb[109].mxu0 }
 0x5b8   : > { %v2199_v24 = vadd.f32 %v3909_v10, %v2198_v55  ;;  %v2760_v5 = vpop.f32.mrb[110].mxu0 }
 0x5b9   : > { %2243 = vst [vmem:[%s3913_s30 + $0xf0] sm:$0xff] %v2207_v14  ;;  %v2210_v45 = vadd.f32 %v2760_v5, %v3909_v10  ;;  %v2201_v47 = vpop.f32.mrb[111].mxu0 }
 0x5ba   : > { %2241 = vst [vmem:[%s3913_s30 + $0xe0] sm:$0xff] %v2199_v24  ;;  %v2202_v12 = vadd.f32 %v3909_v10, %v2201_v47 }
 0x5bb   : > { %2244 = vst [vmem:[%s3913_s30 + $0xf8] sm:$0xff] %v2210_v45 }
 0x5bc   : > { %2242 = vst [vmem:[%s3913_s30 + $0xe8] sm:$0xff] %v2202_v12 }
 0x5bd   : > { %2871 = shalt.err (!%p2868_p3)
}
 0x5be   : > { %s2872_s27 = scalar_lea.hbm %s3978_s22, 4096  ;;  %s2876_s16 = scalar_lea.hbm %s4042_s13, 8192 }
 0x5bf   : > { %p2873_p4 = scmp.ne.s32.totalorder %s3978_s22, %s2872_s27  ;;  %p2877_p9 = scmp.lt.u32.totalorder %s3978_s22, %s4042_s13 }
 0x5c0   : > { %p2878_p10 = scmp.lt.u32.totalorder %s2876_s16, %s2872_s27  ;;  %p2880_p12 = scmp.lt.u32.totalorder %s2872_s27, %s3978_s22 }
 0x5c1   : > { %p2874_p7 = pnand %p2873_p4, %p3034_p5 }
 0x5c2   : > { %p2879_p11 = por %p2878_p10, %p2877_p9 }
 0x5c3   : > { %p2875_p8 = pneg %p2874_p7 }
 0x5c4   : > { %p2881_p13 = por %p2880_p12, %p2879_p11 }
 0x5c6   : > { %p2882_p0 = pnand %p2881_p13, %p2875_p8 }
 0x5c8   : > { %2885 = shalt.err (!%p2882_p0)
}
 0x5c9   : > { %s2924_s17 = smov 128   ;;  %s2925_s23 = smov 8  }
 0x5ca   : > { %2767 = dma.vmem_to_hbm [thread:$0]  (%p3034_p5), %s3980_s24, 4096, %s3978_s22, %s3988_s29, %s2924_s17, %s2924_s17, %s2925_s23  }
 0x5cb PF: > { %p2773_p1 = scmp.ge.s32.totalorder %s2920_s28, 2  ;;  %s2274_s30 = sand.u32 1, %s2908_s25  }
 0x5cc   : > { %s2275_s27 = scalar_lea.sflag [#allocation3], %s2274_s30 }
 0x5cd   : > { %p2770_p2 = pnand %p2773_p1, %p3038_p6 }
 0x5cf   : > { %2903 = dma.done.wait (!%p2770_p2), %s2275_s27, 4096  }
 0x5d0   : > { %2905 = vsyncadd (!%p2770_p2), %s2275_s27, 4294963200  ;;  %s4105_s15 = sld [smem:[#allocation5_spill]]  ;;  %s4106_s27 = sld [smem:[#allocation6_spill]] }
 0x5d1   : > { %p23_p3 = scmp.ge.s32.totalorder %s3021_s14, 4   ;;  %s4107_s25 = smov %s2912_s26 }
 0x5d2   : > { %s4109_s28 = smov %s3021_s14 }
 0x5d3   :  { %25 = sbr.rel (!%p23_p3) target bundleno = 3 (0x3), region = 107 }
 0x5d6   : > { %s4108_s26 = smov %s4105_s15 }
 0x5da   :  { %2280 = vsyncpa [#allocation3], 1 }
 0x5db   :  { %2282 = vsyncpa [#allocation3 + $0x1], 1 }

</bundles_post_ra>
